<compile_context>
chip_gen: v7x
topology: tpu7x:2x2x1
jax: 0.10.0
libtpu: 0.0.40
codegen_flags: <defaults>
</compile_context>

<pallas_src>
import functools

import jax
import jax.numpy as jnp
from jax import lax
from jax.experimental import pallas as pl
from jax.experimental.pallas import tpu as pltpu


def _condconv_kernel(xp_ref, awT_ref, ab_ref, wb_ref, o_ref, agg_ref, *,
                     TN, ks, stride, Hp, Wp, Ho, Wo, K, inv_hw):
    """Fused CondConv forward for a block of TN samples.

    xp_ref : (TN, Cin, EXT)     bf16  zero-padded, flattened input + zero tail
    awT_ref: (Cin, K)           f32   attention 1x1-conv weight, transposed (resident)
    ab_ref : (1, K)             f32   attention 1x1-conv bias (resident)
    wb_ref : (K, Cout, R)       bf16  expert bank, R = ks*ks*Cin, (kh,kw,c)-minor (resident)
    o_ref  : (TN, Cout, Ho*Wo)  f32   lane-dense output block
    agg_ref: (TN, Cout, R)      bf16  scratch: per-sample aggregated conv weights
    """
    HPWP = Hp * Wp
    Cin = awT_ref.shape[0]
    Cout = o_ref.shape[1]

    # ---- attention, batched over the TN samples ------------------------------
    # adaptive_avg_pool2d(1) == mean over H*W; padding and the tail are zeros, so the
    # sum over the extended axis equals the sum over the original spatial extent.
    # Mean-first: no K x Cin x H*W matmul, just a lane reduction (XLU) + tiny matmul.
    pooled = jnp.sum(xp_ref[...].astype(jnp.float32), axis=-1) * inv_hw        # (TN, Cin)
    logits = jnp.dot(pooled, awT_ref[...],
                     preferred_element_type=jnp.float32) + ab_ref[...]         # (TN, K)
    att = jax.nn.sigmoid(logits)                                                # (TN, K) f32

    # ---- aggregate the expert bank for all TN samples ------------------------
    # K-term weighted sum on the VPU; f32 accumulation (portable to v5e, which has no
    # bf16 VALU), bf16 result for the MXU.
    agg = att[:, 0][:, None, None] * wb_ref[0][None].astype(jnp.float32)
    for k in range(1, K):
        agg = agg + att[:, k][:, None, None] * wb_ref[k][None].astype(jnp.float32)
    agg_ref[...] = agg.astype(jnp.bfloat16)                                     # (TN, Cout, R)

    # ---- per-sample convolution: ks*ks shifted-window matmuls ----------------
    # acc[o, p] = sum_{kh,kw,c} agg[o,(kh*ks+kw)*Cin+c] * xpad[c, p + kh*Wp + kw]
    # The shift is a static lane-offset slice of the flattened padded image (the zero
    # tail guarantees the window stays in bounds; any tail garbage only lands in
    # columns discarded below).  Accumulation stays in f32 vregs; there is no im2col
    # slab and no per-(kh,kw) strided-reshape relayout.
    def sample(n, carry):
        xn = xp_ref[n]                                        # (Cin, EXT)  bf16
        aggn = agg_ref[n]                                     # (Cout, R)   bf16
        acc = jnp.zeros((Cout, HPWP), jnp.float32)
        for kh in range(ks):
            for kw in range(ks):
                s = kh * Wp + kw
                win = xn[:, s:s + HPWP]                       # (Cin, Hp*Wp)
                r = (kh * ks + kw) * Cin
                acc = acc + jnp.dot(aggn[:, r:r + Cin], win,
                                    preferred_element_type=jnp.float32)
        # Select valid output positions once (dense stride-1 correlation computed
        # above, subsampled here) -> one relayout instead of ks*ks of them.
        out = acc.reshape(Cout, Hp, Wp)[:, 0:(Ho - 1) * stride + 1:stride,
                                           0:(Wo - 1) * stride + 1:stride]
        o_ref[n] = out.reshape(Cout, Ho * Wo).astype(o_ref.dtype)
        return carry

    lax.fori_loop(0, TN, sample, 0, unroll=True)


def cond_conv(x, att_w, att_b, weight, *, stride=1, padding=1):
    """CondConv forward (groups=1).

    x:      (N, Cin, H, W)            float32, NCHW
    att_w:  (K, Cin)                  1x1-conv weight of the attention head
    att_b:  (K,)                      1x1-conv bias of the attention head
    weight: (K, Cout, Cin, ks, ks)    expert weight bank
    """
    # TODO(synk): groups > 1 is not implemented (module default groups=1 is covered).
    N, Cin, H, W = x.shape
    K, Cout, Cin_w, ks, ks2 = weight.shape
    assert Cin_w == Cin and ks2 == ks

    Hp, Wp = H + 2 * padding, W + 2 * padding
    Ho = (Hp - ks) // stride + 1
    Wo = (Wp - ks) // stride + 1
    R = ks * ks * Cin
    HPWP = Hp * Wp
    EXT = HPWP + (ks - 1) * (Wp + 1)    # room for the largest (kh,kw) shifted window

    # Padding + spatial flattening + shifted-window zero tail + bf16 cast in one fused
    # XLA pass over x (read f32 once, write bf16 once).  bf16 halves the dominant HBM
    # read and feeds the MXU natively; the kernel never zeroes or relayouts padding.
    xp = jnp.pad(x, ((0, 0), (0, 0), (padding, padding), (padding, padding)))
    xp = xp.reshape(N, Cin, HPWP)
    if EXT > HPWP:
        xp = jnp.pad(xp, ((0, 0), (0, 0), (0, EXT - HPWP)))
    xp = xp.astype(jnp.bfloat16)

    awT = jnp.transpose(att_w).astype(jnp.float32)                       # (Cin, K)
    ab = att_b.reshape(1, K).astype(jnp.float32)
    # Expert bank permuted so the contraction index is (kh, kw, c)-minor, matching the
    # shifted-window weight slices; bf16 halves its HBM/VMEM footprint.
    wbank = jnp.transpose(weight, (0, 1, 3, 4, 2)).reshape(
        K, Cout, R).astype(jnp.bfloat16)

    # Generation-aware VMEM request: ~80% of physical.  v7x has only 64 MiB per TC, so
    # never ask for the whole thing; v5e/v6e (128 MiB) get a correspondingly larger cap.
    try:
        vmem_cap = int(pltpu.get_tpu_info().vmem_capacity_bytes)
    except Exception:
        vmem_cap = 64 * 1024 * 1024
    vmem_limit = max(16 * 1024 * 1024, min(int(vmem_cap * 0.8), 112 * 1024 * 1024))

    # Samples per grid step, derived from the VMEM budget (double-buffered in/out
    # blocks, agg scratch, f32 accumulator headroom).  Batching samples amortizes the
    # ~0.35us per-step pipeline overhead that dominated the per-sample-grid version.
    per_sample = (2 * Cin * EXT * 2            # double-buffered bf16 input block
                  + 2 * Cout * Ho * Wo * 4     # double-buffered f32 output block
                  + Cout * R * 2               # aggregated-weight scratch row
                  + Cout * HPWP * 4)           # f32 accumulator headroom
    budget = max(per_sample, vmem_limit // 2 - 2 * K * Cout * R)
    cap = int(max(1, min(N, 8, budget // per_sample)))
    TN = 1
    for d in range(1, cap + 1):               # largest divisor of N within the budget
        if N % d == 0:
            TN = d

    # TODO(synk): very large Cin*Hp*Wp (e.g. 256ch @ 112x112) would additionally need a
    # spatial tile over Ho*Wo to fit v7x's 64 MiB VMEM; not needed at these shapes.
    kernel = functools.partial(
        _condconv_kernel, TN=TN, ks=ks, stride=stride,
        Hp=Hp, Wp=Wp, Ho=Ho, Wo=Wo, K=K, inv_hw=1.0 / (H * W))

    out_flat = pl.pallas_call(
        kernel,
        # f32 output preserves the module dtype (bf16 would halve writeback if the
        # consumer tolerated it).  Lane dim Ho*Wo stays >= 128-dense.
        out_shape=jax.ShapeDtypeStruct((N, Cout, Ho * Wo), jnp.float32),
        grid=(N // TN,),
        in_specs=[
            pl.BlockSpec((TN, Cin, EXT), lambda b: (b, 0, 0)),
            # Constant-index operands are VMEM-resident; single-buffer them.
            pl.BlockSpec((Cin, K), lambda b: (0, 0),
                         pipeline_mode=pl.Buffered(1)),
            pl.BlockSpec((1, K), lambda b: (0, 0),
                         pipeline_mode=pl.Buffered(1)),
            pl.BlockSpec((K, Cout, R), lambda b: (0, 0, 0),
                         pipeline_mode=pl.Buffered(1)),
        ],
        out_specs=pl.BlockSpec((TN, Cout, Ho * Wo), lambda b: (b, 0, 0)),
        scratch_shapes=[pltpu.VMEM((TN, Cout, R), jnp.bfloat16)],
        compiler_params=pltpu.CompilerParams(
            dimension_semantics=("parallel",),      # megacore split over sample blocks
            vmem_limit_bytes=vmem_limit),
    )(xp, awT, ab, wbank)

    return out_flat.reshape(N, Cout, Ho, Wo)


# ---------------------------------------------------------------------------
# Pure-JAX references (module semantics) for correctness checks
# ---------------------------------------------------------------------------
def cond_conv_ref(x, att_w, att_b, weight, *, stride=1, padding=1, quantize=False):
    """quantize=True mimics the kernel's bf16 MXU operands (f32 accumulation)."""
    N = x.shape[0]
    K, Cout, Cin, ks, _ = weight.shape
    pooled = x.mean(axis=(2, 3))
    att = jax.nn.sigmoid(pooled @ att_w.T + att_b)
    w = weight
    xin = x
    if quantize:
        w = weight.astype(jnp.bfloat16).astype(jnp.float32)
        xin = x.astype(jnp.bfloat16).astype(jnp.float32)
    agg = (att @ w.reshape(K, -1)).reshape(N, Cout, Cin, ks, ks)
    if quantize:
        agg = agg.astype(jnp.bfloat16).astype(jnp.float32)
    outs = []
    for n in range(N):
        o = jax.lax.conv_general_dilated(
            xin[n:n + 1], agg[n],
            window_strides=(stride, stride),
            padding=[(padding, padding), (padding, padding)],
            dimension_numbers=("NCHW", "OIHW", "NCHW"))
        outs.append(o)
    return jnp.concatenate(outs, axis=0)


if __name__ == "__main__":
    # Small shapes consistent with the module (Cin=Cout=4, ks=3, K=4 experts).
    N, Cin, Cout, H, W, ks, K = 2, 4, 4, 16, 16, 3, 4
    stride, padding = 1, 1

    key = jax.random.PRNGKey(0)
    kx, kwt, kaw, kab = jax.random.split(key, 4)
    x = jax.random.normal(kx, (N, Cin, H, W), jnp.float32)
    weight = jax.random.normal(kwt, (K, Cout, Cin, ks, ks), jnp.float32)   # expert bank
    att_w = jax.random.normal(kaw, (K, Cin), jnp.float32) * 0.1            # 1x1 conv weight
    att_b = jax.random.normal(kab, (K,), jnp.float32) * 0.1                # 1x1 conv bias

    out = cond_conv(x, att_w, att_b, weight, stride=stride, padding=padding)
    out = jax.block_until_ready(out)
    assert out.shape == (N, Cout, H, W), out.shape

    # Tight check against a reference quantized the same way as the kernel (bf16 x,
    # bf16 expert weights, bf16 aggregated weights, f32 accumulation).
    ref_q = cond_conv_ref(x, att_w, att_b, weight, stride=stride, padding=padding,
                          quantize=True)
    assert jnp.allclose(out, ref_q, atol=1e-1, rtol=2e-2), \
        float(jnp.abs(out - ref_q).max())

    # Loose check against the pure-f32 module semantics (documents the bf16 deviation).
    ref_f = cond_conv_ref(x, att_w, att_b, weight, stride=stride, padding=padding,
                          quantize=False)
    assert jnp.allclose(out, ref_f, atol=3e-1, rtol=3e-2), \
        float(jnp.abs(out - ref_f).max())

    print("KERNEL_OK")
</pallas_src>

<mosaic_0001>
module attributes {stable_mosaic.version = 11 : i64} {
  func.func @_condconv_kernel(%arg0: i32, %arg1: memref<2x4x362xbf16, #tpu.memory_space<vmem>>, %arg2: memref<4x4xf32, #tpu.memory_space<vmem>>, %arg3: memref<1x4xf32, #tpu.memory_space<vmem>>, %arg4: memref<4x4x36xbf16, #tpu.memory_space<vmem>>, %arg5: memref<2x4x256xf32, #tpu.memory_space<vmem>>, %arg6: memref<2x4x36xbf16, #tpu.memory_space<vmem>>) attributes {dimension_semantics = [#tpu.dimension_semantics<parallel>], iteration_bounds = array<i64: 1>, scalar_prefetch = 0 : i64, scratch_operands = 1 : i64, tpu.core_type = #tpu.core_type<tc>, window_params = [{transform_indices = @transform_0, window_bounds = array<i64: 2, 4, 362>}, {pipeline_mode = #tpu.pipeline_mode<synchronous>, transform_indices = @transform_1, window_bounds = array<i64: 4, 4>}, {pipeline_mode = #tpu.pipeline_mode<synchronous>, transform_indices = @transform_2, window_bounds = array<i64: 1, 4>}, {pipeline_mode = #tpu.pipeline_mode<synchronous>, transform_indices = @transform_3, window_bounds = array<i64: 4, 4, 36>}, {transform_indices = @transform_4, window_bounds = array<i64: 2, 4, 256>}]} {
    %c0 = arith.constant 0 : index
    %c0_0 = arith.constant 0 : index
    %c0_1 = arith.constant 0 : index
    %0 = vector.load %arg1[%c0, %c0_0, %c0_1] : memref<2x4x362xbf16, #tpu.memory_space<vmem>>, vector<2x4x362xbf16>
    %1 = arith.extf %0 : vector<2x4x362xbf16> to vector<2x4x362xf32>
    %cst = arith.constant dense<0.000000e+00> : vector<2x4xf32>
    %2 = vector.multi_reduction <add>, %1, %cst [2] : vector<2x4x362xf32> to vector<2x4xf32>
    %cst_2 = arith.constant 3.906250e-03 : f32
    %3 = vector.broadcast %cst_2 : f32 to vector<2x4xf32>
    %4 = arith.mulf %2, %3 : vector<2x4xf32>
    %c0_3 = arith.constant 0 : index
    %c0_4 = arith.constant 0 : index
    %5 = vector.load %arg2[%c0_3, %c0_4] : memref<4x4xf32, #tpu.memory_space<vmem>>, vector<4x4xf32>
    %cst_5 = arith.constant dense<0.000000e+00> : vector<2x4xf32>
    %6 = tpu.matmul %4, %5, %cst_5 {dimension_numbers = #tpu.dot_dimension_numbers<[1], [0], [0], [1], [0, 0, 1, 1], [], []>} : vector<2x4xf32>, vector<4x4xf32>, vector<2x4xf32> -> vector<2x4xf32>
    %c0_6 = arith.constant 0 : index
    %c0_7 = arith.constant 0 : index
    %7 = vector.load %arg3[%c0_6, %c0_7] : memref<1x4xf32, #tpu.memory_space<vmem>>, vector<1x4xf32>
    %8 = vector.broadcast %7 : vector<1x4xf32> to vector<2x4xf32>
    %9 = arith.addf %6, %8 : vector<2x4xf32>
    %10 = arith.negf %9 : vector<2x4xf32>
    %11 = math.exp %10 : vector<2x4xf32>
    %cst_8 = arith.constant 1.000000e+00 : f32
    %12 = vector.broadcast %cst_8 : f32 to vector<2x4xf32>
    %13 = arith.addf %12, %11 : vector<2x4xf32>
    %14 = arith.divf %12, %13 : vector<2x4xf32>
    %15 = vector.extract_strided_slice %14 {offsets = [0, 0], sizes = [2, 1], strides = [1, 1]} : vector<2x4xf32> to vector<2x1xf32>
    %16 = vector.shape_cast %15 : vector<2x1xf32> to vector<2xf32>
    %17 = vector.shape_cast %16 : vector<2xf32> to vector<2x1x1xf32>
    %c0_9 = arith.constant 0 : index
    %c0_10 = arith.constant 0 : index
    %c0_11 = arith.constant 0 : index
    %18 = vector.load %arg4[%c0_9, %c0_10, %c0_11] : memref<4x4x36xbf16, #tpu.memory_space<vmem>>, vector<1x4x36xbf16>
    %19 = vector.shape_cast %18 : vector<1x4x36xbf16> to vector<4x36xbf16>
    %20 = vector.shape_cast %19 : vector<4x36xbf16> to vector<1x4x36xbf16>
    %21 = arith.extf %20 : vector<1x4x36xbf16> to vector<1x4x36xf32>
    %22 = vector.broadcast %17 : vector<2x1x1xf32> to vector<2x4x36xf32>
    %23 = vector.broadcast %21 : vector<1x4x36xf32> to vector<2x4x36xf32>
    %24 = arith.mulf %22, %23 : vector<2x4x36xf32>
    %25 = vector.extract_strided_slice %14 {offsets = [0, 1], sizes = [2, 1], strides = [1, 1]} : vector<2x4xf32> to vector<2x1xf32>
    %26 = vector.shape_cast %25 : vector<2x1xf32> to vector<2xf32>
    %27 = vector.shape_cast %26 : vector<2xf32> to vector<2x1x1xf32>
    %c1 = arith.constant 1 : index
    %c0_12 = arith.constant 0 : index
    %c0_13 = arith.constant 0 : index
    %28 = vector.load %arg4[%c1, %c0_12, %c0_13] : memref<4x4x36xbf16, #tpu.memory_space<vmem>>, vector<1x4x36xbf16>
    %29 = vector.shape_cast %28 : vector<1x4x36xbf16> to vector<4x36xbf16>
    %30 = vector.shape_cast %29 : vector<4x36xbf16> to vector<1x4x36xbf16>
    %31 = arith.extf %30 : vector<1x4x36xbf16> to vector<1x4x36xf32>
    %32 = vector.broadcast %27 : vector<2x1x1xf32> to vector<2x4x36xf32>
    %33 = vector.broadcast %31 : vector<1x4x36xf32> to vector<2x4x36xf32>
    %34 = arith.mulf %32, %33 : vector<2x4x36xf32>
    %35 = arith.addf %24, %34 : vector<2x4x36xf32>
    %36 = vector.extract_strided_slice %14 {offsets = [0, 2], sizes = [2, 1], strides = [1, 1]} : vector<2x4xf32> to vector<2x1xf32>
    %37 = vector.shape_cast %36 : vector<2x1xf32> to vector<2xf32>
    %38 = vector.shape_cast %37 : vector<2xf32> to vector<2x1x1xf32>
    %c2 = arith.constant 2 : index
    %c0_14 = arith.constant 0 : index
    %c0_15 = arith.constant 0 : index
    %39 = vector.load %arg4[%c2, %c0_14, %c0_15] : memref<4x4x36xbf16, #tpu.memory_space<vmem>>, vector<1x4x36xbf16>
    %40 = vector.shape_cast %39 : vector<1x4x36xbf16> to vector<4x36xbf16>
    %41 = vector.shape_cast %40 : vector<4x36xbf16> to vector<1x4x36xbf16>
    %42 = arith.extf %41 : vector<1x4x36xbf16> to vector<1x4x36xf32>
    %43 = vector.broadcast %38 : vector<2x1x1xf32> to vector<2x4x36xf32>
    %44 = vector.broadcast %42 : vector<1x4x36xf32> to vector<2x4x36xf32>
    %45 = arith.mulf %43, %44 : vector<2x4x36xf32>
    %46 = arith.addf %35, %45 : vector<2x4x36xf32>
    %47 = vector.extract_strided_slice %14 {offsets = [0, 3], sizes = [2, 1], strides = [1, 1]} : vector<2x4xf32> to vector<2x1xf32>
    %48 = vector.shape_cast %47 : vector<2x1xf32> to vector<2xf32>
    %49 = vector.shape_cast %48 : vector<2xf32> to vector<2x1x1xf32>
    %c3 = arith.constant 3 : index
    %c0_16 = arith.constant 0 : index
    %c0_17 = arith.constant 0 : index
    %50 = vector.load %arg4[%c3, %c0_16, %c0_17] : memref<4x4x36xbf16, #tpu.memory_space<vmem>>, vector<1x4x36xbf16>
    %51 = vector.shape_cast %50 : vector<1x4x36xbf16> to vector<4x36xbf16>
    %52 = vector.shape_cast %51 : vector<4x36xbf16> to vector<1x4x36xbf16>
    %53 = arith.extf %52 : vector<1x4x36xbf16> to vector<1x4x36xf32>
    %54 = vector.broadcast %49 : vector<2x1x1xf32> to vector<2x4x36xf32>
    %55 = vector.broadcast %53 : vector<1x4x36xf32> to vector<2x4x36xf32>
    %56 = arith.mulf %54, %55 : vector<2x4x36xf32>
    %57 = arith.addf %46, %56 : vector<2x4x36xf32>
    %58 = arith.truncf %57 : vector<2x4x36xf32> to vector<2x4x36xbf16>
    %c0_18 = arith.constant 0 : index
    %c0_19 = arith.constant 0 : index
    %c0_20 = arith.constant 0 : index
    %59 = vector.load %arg6[%c0_18, %c0_19, %c0_20] : memref<2x4x36xbf16, #tpu.memory_space<vmem>>, vector<2x4x36xbf16>
    tpu.vector_store %arg6[%c0_18, %c0_19, %c0_20], %58 {strides = array<i32>} : memref<2x4x36xbf16, #tpu.memory_space<vmem>>, vector<2x4x36xbf16>,
    %c0_i32 = arith.constant 0 : i32
    %60 = arith.index_cast %c0_i32 : i32 to index
    %c0_21 = arith.constant 0 : index
    %c0_22 = arith.constant 0 : index
    %61 = vector.load %arg1[%60, %c0_21, %c0_22] : memref<2x4x362xbf16, #tpu.memory_space<vmem>>, vector<1x4x362xbf16>
    %62 = vector.shape_cast %61 : vector<1x4x362xbf16> to vector<4x362xbf16>
    %63 = arith.index_cast %c0_i32 : i32 to index
    %c0_23 = arith.constant 0 : index
    %c0_24 = arith.constant 0 : index
    %64 = vector.load %arg6[%63, %c0_23, %c0_24] : memref<2x4x36xbf16, #tpu.memory_space<vmem>>, vector<1x4x36xbf16>
    %65 = vector.shape_cast %64 : vector<1x4x36xbf16> to vector<4x36xbf16>
    %cst_25 = arith.constant 0.000000e+00 : f32
    %66 = vector.broadcast %cst_25 : f32 to vector<4x324xf32>
    %67 = vector.extract_strided_slice %62 {offsets = [0, 0], sizes = [4, 324], strides = [1, 1]} : vector<4x362xbf16> to vector<4x324xbf16>
    %68 = vector.extract_strided_slice %65 {offsets = [0, 0], sizes = [4, 4], strides = [1, 1]} : vector<4x36xbf16> to vector<4x4xbf16>
    %cst_26 = arith.constant dense<0.000000e+00> : vector<4x324xf32>
    %69 = tpu.matmul %68, %67, %cst_26 {dimension_numbers = #tpu.dot_dimension_numbers<[1], [0], [0], [1], [0, 0, 1, 1], [], []>} : vector<4x4xbf16>, vector<4x324xbf16>, vector<4x324xf32> -> vector<4x324xf32>
    %70 = arith.addf %66, %69 : vector<4x324xf32>
    %71 = vector.extract_strided_slice %62 {offsets = [0, 1], sizes = [4, 324], strides = [1, 1]} : vector<4x362xbf16> to vector<4x324xbf16>
    %72 = vector.extract_strided_slice %65 {offsets = [0, 4], sizes = [4, 4], strides = [1, 1]} : vector<4x36xbf16> to vector<4x4xbf16>
    %cst_27 = arith.constant dense<0.000000e+00> : vector<4x324xf32>
    %73 = tpu.matmul %72, %71, %cst_27 {dimension_numbers = #tpu.dot_dimension_numbers<[1], [0], [0], [1], [0, 0, 1, 1], [], []>} : vector<4x4xbf16>, vector<4x324xbf16>, vector<4x324xf32> -> vector<4x324xf32>
    %74 = arith.addf %70, %73 : vector<4x324xf32>
    %75 = vector.extract_strided_slice %62 {offsets = [0, 2], sizes = [4, 324], strides = [1, 1]} : vector<4x362xbf16> to vector<4x324xbf16>
    %76 = vector.extract_strided_slice %65 {offsets = [0, 8], sizes = [4, 4], strides = [1, 1]} : vector<4x36xbf16> to vector<4x4xbf16>
    %cst_28 = arith.constant dense<0.000000e+00> : vector<4x324xf32>
    %77 = tpu.matmul %76, %75, %cst_28 {dimension_numbers = #tpu.dot_dimension_numbers<[1], [0], [0], [1], [0, 0, 1, 1], [], []>} : vector<4x4xbf16>, vector<4x324xbf16>, vector<4x324xf32> -> vector<4x324xf32>
    %78 = arith.addf %74, %77 : vector<4x324xf32>
    %79 = vector.extract_strided_slice %62 {offsets = [0, 18], sizes = [4, 324], strides = [1, 1]} : vector<4x362xbf16> to vector<4x324xbf16>
    %80 = vector.extract_strided_slice %65 {offsets = [0, 12], sizes = [4, 4], strides = [1, 1]} : vector<4x36xbf16> to vector<4x4xbf16>
    %cst_29 = arith.constant dense<0.000000e+00> : vector<4x324xf32>
    %81 = tpu.matmul %80, %79, %cst_29 {dimension_numbers = #tpu.dot_dimension_numbers<[1], [0], [0], [1], [0, 0, 1, 1], [], []>} : vector<4x4xbf16>, vector<4x324xbf16>, vector<4x324xf32> -> vector<4x324xf32>
    %82 = arith.addf %78, %81 : vector<4x324xf32>
    %83 = vector.extract_strided_slice %62 {offsets = [0, 19], sizes = [4, 324], strides = [1, 1]} : vector<4x362xbf16> to vector<4x324xbf16>
    %84 = vector.extract_strided_slice %65 {offsets = [0, 16], sizes = [4, 4], strides = [1, 1]} : vector<4x36xbf16> to vector<4x4xbf16>
    %cst_30 = arith.constant dense<0.000000e+00> : vector<4x324xf32>
    %85 = tpu.matmul %84, %83, %cst_30 {dimension_numbers = #tpu.dot_dimension_numbers<[1], [0], [0], [1], [0, 0, 1, 1], [], []>} : vector<4x4xbf16>, vector<4x324xbf16>, vector<4x324xf32> -> vector<4x324xf32>
    %86 = arith.addf %82, %85 : vector<4x324xf32>
    %87 = vector.extract_strided_slice %62 {offsets = [0, 20], sizes = [4, 324], strides = [1, 1]} : vector<4x362xbf16> to vector<4x324xbf16>
    %88 = vector.extract_strided_slice %65 {offsets = [0, 20], sizes = [4, 4], strides = [1, 1]} : vector<4x36xbf16> to vector<4x4xbf16>
    %cst_31 = arith.constant dense<0.000000e+00> : vector<4x324xf32>
    %89 = tpu.matmul %88, %87, %cst_31 {dimension_numbers = #tpu.dot_dimension_numbers<[1], [0], [0], [1], [0, 0, 1, 1], [], []>} : vector<4x4xbf16>, vector<4x324xbf16>, vector<4x324xf32> -> vector<4x324xf32>
    %90 = arith.addf %86, %89 : vector<4x324xf32>
    %91 = vector.extract_strided_slice %62 {offsets = [0, 36], sizes = [4, 324], strides = [1, 1]} : vector<4x362xbf16> to vector<4x324xbf16>
    %92 = vector.extract_strided_slice %65 {offsets = [0, 24], sizes = [4, 4], strides = [1, 1]} : vector<4x36xbf16> to vector<4x4xbf16>
    %cst_32 = arith.constant dense<0.000000e+00> : vector<4x324xf32>
    %93 = tpu.matmul %92, %91, %cst_32 {dimension_numbers = #tpu.dot_dimension_numbers<[1], [0], [0], [1], [0, 0, 1, 1], [], []>} : vector<4x4xbf16>, vector<4x324xbf16>, vector<4x324xf32> -> vector<4x324xf32>
    %94 = arith.addf %90, %93 : vector<4x324xf32>
    %95 = vector.extract_strided_slice %62 {offsets = [0, 37], sizes = [4, 324], strides = [1, 1]} : vector<4x362xbf16> to vector<4x324xbf16>
    %96 = vector.extract_strided_slice %65 {offsets = [0, 28], sizes = [4, 4], strides = [1, 1]} : vector<4x36xbf16> to vector<4x4xbf16>
    %cst_33 = arith.constant dense<0.000000e+00> : vector<4x324xf32>
    %97 = tpu.matmul %96, %95, %cst_33 {dimension_numbers = #tpu.dot_dimension_numbers<[1], [0], [0], [1], [0, 0, 1, 1], [], []>} : vector<4x4xbf16>, vector<4x324xbf16>, vector<4x324xf32> -> vector<4x324xf32>
    %98 = arith.addf %94, %97 : vector<4x324xf32>
    %99 = vector.extract_strided_slice %62 {offsets = [0, 38], sizes = [4, 324], strides = [1, 1]} : vector<4x362xbf16> to vector<4x324xbf16>
    %100 = vector.extract_strided_slice %65 {offsets = [0, 32], sizes = [4, 4], strides = [1, 1]} : vector<4x36xbf16> to vector<4x4xbf16>
    %cst_34 = arith.constant dense<0.000000e+00> : vector<4x324xf32>
    %101 = tpu.matmul %100, %99, %cst_34 {dimension_numbers = #tpu.dot_dimension_numbers<[1], [0], [0], [1], [0, 0, 1, 1], [], []>} : vector<4x4xbf16>, vector<4x324xbf16>, vector<4x324xf32> -> vector<4x324xf32>
    %102 = arith.addf %98, %101 : vector<4x324xf32>
    %103 = vector.shape_cast %102 : vector<4x324xf32> to vector<4x18x18xf32>
    %104 = vector.extract_strided_slice %103 {offsets = [0, 0, 0], sizes = [4, 16, 16], strides = [1, 1, 1]} : vector<4x18x18xf32> to vector<4x16x16xf32>
    %105 = vector.shape_cast %104 : vector<4x16x16xf32> to vector<4x256xf32>
    %106 = arith.index_cast %c0_i32 : i32 to index
    %c0_35 = arith.constant 0 : index
    %c0_36 = arith.constant 0 : index
    %107 = vector.load %arg5[%106, %c0_35, %c0_36] : memref<2x4x256xf32, #tpu.memory_space<vmem>>, vector<1x4x256xf32>
    %108 = vector.shape_cast %107 : vector<1x4x256xf32> to vector<4x256xf32>
    %109 = vector.shape_cast %105 : vector<4x256xf32> to vector<1x4x256xf32>
    tpu.vector_store %arg5[%106, %c0_35, %c0_36], %109 {strides = array<i32>} : memref<2x4x256xf32, #tpu.memory_space<vmem>>, vector<1x4x256xf32>,
    %c1_i32 = arith.constant 1 : i32
    %110 = arith.index_cast %c1_i32 : i32 to index
    %c0_37 = arith.constant 0 : index
    %c0_38 = arith.constant 0 : index
    %111 = vector.load %arg1[%110, %c0_37, %c0_38] : memref<2x4x362xbf16, #tpu.memory_space<vmem>>, vector<1x4x362xbf16>
    %112 = vector.shape_cast %111 : vector<1x4x362xbf16> to vector<4x362xbf16>
    %113 = arith.index_cast %c1_i32 : i32 to index
    %c0_39 = arith.constant 0 : index
    %c0_40 = arith.constant 0 : index
    %114 = vector.load %arg6[%113, %c0_39, %c0_40] : memref<2x4x36xbf16, #tpu.memory_space<vmem>>, vector<1x4x36xbf16>
    %115 = vector.shape_cast %114 : vector<1x4x36xbf16> to vector<4x36xbf16>
    %cst_41 = arith.constant 0.000000e+00 : f32
    %116 = vector.broadcast %cst_41 : f32 to vector<4x324xf32>
    %117 = vector.extract_strided_slice %112 {offsets = [0, 0], sizes = [4, 324], strides = [1, 1]} : vector<4x362xbf16> to vector<4x324xbf16>
    %118 = vector.extract_strided_slice %115 {offsets = [0, 0], sizes = [4, 4], strides = [1, 1]} : vector<4x36xbf16> to vector<4x4xbf16>
    %cst_42 = arith.constant dense<0.000000e+00> : vector<4x324xf32>
    %119 = tpu.matmul %118, %117, %cst_42 {dimension_numbers = #tpu.dot_dimension_numbers<[1], [0], [0], [1], [0, 0, 1, 1], [], []>} : vector<4x4xbf16>, vector<4x324xbf16>, vector<4x324xf32> -> vector<4x324xf32>
    %120 = arith.addf %116, %119 : vector<4x324xf32>
    %121 = vector.extract_strided_slice %112 {offsets = [0, 1], sizes = [4, 324], strides = [1, 1]} : vector<4x362xbf16> to vector<4x324xbf16>
    %122 = vector.extract_strided_slice %115 {offsets = [0, 4], sizes = [4, 4], strides = [1, 1]} : vector<4x36xbf16> to vector<4x4xbf16>
    %cst_43 = arith.constant dense<0.000000e+00> : vector<4x324xf32>
    %123 = tpu.matmul %122, %121, %cst_43 {dimension_numbers = #tpu.dot_dimension_numbers<[1], [0], [0], [1], [0, 0, 1, 1], [], []>} : vector<4x4xbf16>, vector<4x324xbf16>, vector<4x324xf32> -> vector<4x324xf32>
    %124 = arith.addf %120, %123 : vector<4x324xf32>
    %125 = vector.extract_strided_slice %112 {offsets = [0, 2], sizes = [4, 324], strides = [1, 1]} : vector<4x362xbf16> to vector<4x324xbf16>
    %126 = vector.extract_strided_slice %115 {offsets = [0, 8], sizes = [4, 4], strides = [1, 1]} : vector<4x36xbf16> to vector<4x4xbf16>
    %cst_44 = arith.constant dense<0.000000e+00> : vector<4x324xf32>
    %127 = tpu.matmul %126, %125, %cst_44 {dimension_numbers = #tpu.dot_dimension_numbers<[1], [0], [0], [1], [0, 0, 1, 1], [], []>} : vector<4x4xbf16>, vector<4x324xbf16>, vector<4x324xf32> -> vector<4x324xf32>
    %128 = arith.addf %124, %127 : vector<4x324xf32>
    %129 = vector.extract_strided_slice %112 {offsets = [0, 18], sizes = [4, 324], strides = [1, 1]} : vector<4x362xbf16> to vector<4x324xbf16>
    %130 = vector.extract_strided_slice %115 {offsets = [0, 12], sizes = [4, 4], strides = [1, 1]} : vector<4x36xbf16> to vector<4x4xbf16>
    %cst_45 = arith.constant dense<0.000000e+00> : vector<4x324xf32>
    %131 = tpu.matmul %130, %129, %cst_45 {dimension_numbers = #tpu.dot_dimension_numbers<[1], [0], [0], [1], [0, 0, 1, 1], [], []>} : vector<4x4xbf16>, vector<4x324xbf16>, vector<4x324xf32> -> vector<4x324xf32>
    %132 = arith.addf %128, %131 : vector<4x324xf32>
    %133 = vector.extract_strided_slice %112 {offsets = [0, 19], sizes = [4, 324], strides = [1, 1]} : vector<4x362xbf16> to vector<4x324xbf16>
    %134 = vector.extract_strided_slice %115 {offsets = [0, 16], sizes = [4, 4], strides = [1, 1]} : vector<4x36xbf16> to vector<4x4xbf16>
    %cst_46 = arith.constant dense<0.000000e+00> : vector<4x324xf32>
    %135 = tpu.matmul %134, %133, %cst_46 {dimension_numbers = #tpu.dot_dimension_numbers<[1], [0], [0], [1], [0, 0, 1, 1], [], []>} : vector<4x4xbf16>, vector<4x324xbf16>, vector<4x324xf32> -> vector<4x324xf32>
    %136 = arith.addf %132, %135 : vector<4x324xf32>
    %137 = vector.extract_strided_slice %112 {offsets = [0, 20], sizes = [4, 324], strides = [1, 1]} : vector<4x362xbf16> to vector<4x324xbf16>
    %138 = vector.extract_strided_slice %115 {offsets = [0, 20], sizes = [4, 4], strides = [1, 1]} : vector<4x36xbf16> to vector<4x4xbf16>
    %cst_47 = arith.constant dense<0.000000e+00> : vector<4x324xf32>
    %139 = tpu.matmul %138, %137, %cst_47 {dimension_numbers = #tpu.dot_dimension_numbers<[1], [0], [0], [1], [0, 0, 1, 1], [], []>} : vector<4x4xbf16>, vector<4x324xbf16>, vector<4x324xf32> -> vector<4x324xf32>
    %140 = arith.addf %136, %139 : vector<4x324xf32>
    %141 = vector.extract_strided_slice %112 {offsets = [0, 36], sizes = [4, 324], strides = [1, 1]} : vector<4x362xbf16> to vector<4x324xbf16>
    %142 = vector.extract_strided_slice %115 {offsets = [0, 24], sizes = [4, 4], strides = [1, 1]} : vector<4x36xbf16> to vector<4x4xbf16>
    %cst_48 = arith.constant dense<0.000000e+00> : vector<4x324xf32>
    %143 = tpu.matmul %142, %141, %cst_48 {dimension_numbers = #tpu.dot_dimension_numbers<[1], [0], [0], [1], [0, 0, 1, 1], [], []>} : vector<4x4xbf16>, vector<4x324xbf16>, vector<4x324xf32> -> vector<4x324xf32>
    %144 = arith.addf %140, %143 : vector<4x324xf32>
    %145 = vector.extract_strided_slice %112 {offsets = [0, 37], sizes = [4, 324], strides = [1, 1]} : vector<4x362xbf16> to vector<4x324xbf16>
    %146 = vector.extract_strided_slice %115 {offsets = [0, 28], sizes = [4, 4], strides = [1, 1]} : vector<4x36xbf16> to vector<4x4xbf16>
    %cst_49 = arith.constant dense<0.000000e+00> : vector<4x324xf32>
    %147 = tpu.matmul %146, %145, %cst_49 {dimension_numbers = #tpu.dot_dimension_numbers<[1], [0], [0], [1], [0, 0, 1, 1], [], []>} : vector<4x4xbf16>, vector<4x324xbf16>, vector<4x324xf32> -> vector<4x324xf32>
    %148 = arith.addf %144, %147 : vector<4x324xf32>
    %149 = vector.extract_strided_slice %112 {offsets = [0, 38], sizes = [4, 324], strides = [1, 1]} : vector<4x362xbf16> to vector<4x324xbf16>
    %150 = vector.extract_strided_slice %115 {offsets = [0, 32], sizes = [4, 4], strides = [1, 1]} : vector<4x36xbf16> to vector<4x4xbf16>
    %cst_50 = arith.constant dense<0.000000e+00> : vector<4x324xf32>
    %151 = tpu.matmul %150, %149, %cst_50 {dimension_numbers = #tpu.dot_dimension_numbers<[1], [0], [0], [1], [0, 0, 1, 1], [], []>} : vector<4x4xbf16>, vector<4x324xbf16>, vector<4x324xf32> -> vector<4x324xf32>
    %152 = arith.addf %148, %151 : vector<4x324xf32>
    %153 = vector.shape_cast %152 : vector<4x324xf32> to vector<4x18x18xf32>
    %154 = vector.extract_strided_slice %153 {offsets = [0, 0, 0], sizes = [4, 16, 16], strides = [1, 1, 1]} : vector<4x18x18xf32> to vector<4x16x16xf32>
    %155 = vector.shape_cast %154 : vector<4x16x16xf32> to vector<4x256xf32>
    %156 = arith.index_cast %c1_i32 : i32 to index
    %c0_51 = arith.constant 0 : index
    %c0_52 = arith.constant 0 : index
    %157 = vector.load %arg5[%156, %c0_51, %c0_52] : memref<2x4x256xf32, #tpu.memory_space<vmem>>, vector<1x4x256xf32>
    %158 = vector.shape_cast %157 : vector<1x4x256xf32> to vector<4x256xf32>
    %159 = vector.shape_cast %155 : vector<4x256xf32> to vector<1x4x256xf32>
    tpu.vector_store %arg5[%156, %c0_51, %c0_52], %159 {strides = array<i32>} : memref<2x4x256xf32, #tpu.memory_space<vmem>>, vector<1x4x256xf32>,
    %c2_i32 = arith.constant 2 : i32
    return
  }
  func.func @transform_0(%arg0: i32) -> (i32, i32, i32) {
    %c0_i32 = arith.constant 0 : i32
    %c0_i32_0 = arith.constant 0 : i32
    %c0_i32_1 = arith.constant 0 : i32
    return %arg0, %c0_i32, %c0_i32_0 : i32, i32, i32
  }
  func.func @transform_1(%arg0: i32) -> (i32, i32) {
    %c0_i32 = arith.constant 0 : i32
    %c0_i32_0 = arith.constant 0 : i32
    %c0_i32_1 = arith.constant 0 : i32
    return %c0_i32, %c0_i32_0 : i32, i32
  }
  func.func @transform_2(%arg0: i32) -> (i32, i32) {
    %c0_i32 = arith.constant 0 : i32
    %c0_i32_0 = arith.constant 0 : i32
    %c0_i32_1 = arith.constant 0 : i32
    return %c0_i32, %c0_i32_0 : i32, i32
  }
  func.func @transform_3(%arg0: i32) -> (i32, i32, i32) {
    %c0_i32 = arith.constant 0 : i32
    %c0_i32_0 = arith.constant 0 : i32
    %c0_i32_1 = arith.constant 0 : i32
    %c0_i32_2 = arith.constant 0 : i32
    return %c0_i32, %c0_i32_0, %c0_i32_1 : i32, i32, i32
  }
  func.func @transform_4(%arg0: i32) -> (i32, i32, i32) {
    %c0_i32 = arith.constant 0 : i32
    %c0_i32_0 = arith.constant 0 : i32
    %c0_i32_1 = arith.constant 0 : i32
    return %arg0, %c0_i32, %c0_i32_0 : i32, i32, i32
  }
}

</mosaic_0001>

<bundles_post_ra>
// kernel: tpu_custom_call.1
= control target key start
LH: loop header
LB: loop body
LE: loop exit
PB: predicated region body
PF: predicated region fallthrough
CT: control target
= control target key end

     0   :  { %9 = vsyncpa [#allocation4], 0  ;;  %s4296_s0 = inlined_call_operand.hbm [shape: bf16[2,4,362], index: 0, kind: input, shape index: {}]   ;;  %s4297_s1 = inlined_call_operand.hbm [shape: f32[4,4], index: 1, kind: input, shape index: {}]   ;;  %s4298_s2 = inlined_call_operand.vmem [shape: f32[1,4], index: 2, kind: input, shape index: {}]   ;;  %s4299_s3 = inlined_call_operand.vmem [shape: bf16[4,4,36], index: 3, kind: input, shape index: {}]   ;;  %s4300_s4 = inlined_call_operand.hbm [shape: f32[2,4,256], index: 4, kind: output, shape index: {}]  }
   0x1   :  { %10 = vsyncpa [#allocation7], 0 }
   0x2   :  { %11 = vsyncpa [#allocation5], 0  ;;  %s3531_s15 = smov [#allocation3]   ;;  %s3459_s19 = scalar_lea.hbm %s4296_s0, 192 }
   0x3   :  { %s17_s16 = sshll.u32 %s3531_s15, 4  ;;  %p3460_p0 = scmp.ne.s32.totalorder %s4296_s0, %s3459_s19  ;;  %s18_s16 = int_to_ptr.vmem [resolvable:$true] %s17_s16 }
   0x4   :  { %p3463_p1 = scmp.lt.u32.totalorder %s3459_s19, %s4296_s0 }
   0x6   :  { %p3465_p2 = pnand %p3463_p1, %p3460_p0 }
   0x8   :  { %3468 = shalt.err (!%p3465_p2)
}
   0x9   :  { %s3469_s24 = scalar_lea.vmem %s18_s16, 192  ;;  %p3474_p4 = scmp.lt.s32.totalorder %s18_s16, %s18_s16 }
   0xa   :  { %p3470_p3 = scmp.ne.s32.totalorder %s18_s16, %s3469_s24  ;;  %p3475_p5 = scmp.lt.s32.totalorder %s3469_s24, %s3469_s24 }
   0xc   :  { %p3476_p6 = por %p3475_p5, %p3474_p4 }
   0xe   :  { %p3477_p7 = pnand %p3476_p6, %p3470_p3 }
  0x10   :  { %3480 = shalt.err (!%p3477_p7)
}
  0x11   :  { %s3532_s25 = smov 96   ;;  %s3533_s26 = smov 6  }
  0x12   :  { %23 = dma.hbm_to_vmem [thread:$0]  %s4296_s0, 192, %s18_s16, [#allocation4], %s3532_s25, %s3532_s25, %s3533_s26  }
  0x13   :  { %s3534_s29 = smov [#allocation6]   ;;  %s3481_s7 = scalar_lea.hbm %s4297_s1, 64 }
  0x14   :  { %s30_s30 = sshll.u32 %s3534_s29, 4  ;;  %p3482_p8 = scmp.ne.s32.totalorder %s4297_s1, %s3481_s7  ;;  %s31_s30 = int_to_ptr.vmem [resolvable:$true] %s30_s30 }
  0x15   :  { %p3485_p9 = scmp.lt.u32.totalorder %s3481_s7, %s4297_s1 }
  0x17   :  { %p3487_p10 = pnand %p3485_p9, %p3482_p8 }
  0x19   :  { %3490 = shalt.err (!%p3487_p10)
}
  0x1a   :  { %s3491_s12 = scalar_lea.vmem %s31_s30, 64  ;;  %p3496_p12 = scmp.lt.s32.totalorder %s31_s30, %s31_s30 }
  0x1b   :  { %p3492_p11 = scmp.ne.s32.totalorder %s31_s30, %s3491_s12  ;;  %p3497_p13 = scmp.lt.s32.totalorder %s3491_s12, %s3491_s12 }
  0x1d   :  { %p3498_p0 = por %p3497_p13, %p3496_p12 }
  0x1f   :  { %p3499_p1 = pnand %p3498_p0, %p3492_p11 }
  0x21   :  { %3502 = shalt.err (!%p3499_p1)
}
  0x22   :  { %33 = dma.hbm_to_vmem [thread:$0]  %s4297_s1, 64, %s31_s30, [#allocation7]  }
  0x23   :  { %3525 = dma.done.wait [#allocation4], 192  }
  0x24   :  { %3526 = vsyncadd [#allocation4], 4294967104 }
  0x25   :  { %3527 = dma.done.wait [#allocation7], 64  }
  0x26   :  { %3528 = vsyncadd [#allocation7], 4294967232  ;;  %v45_v0 = vld [vmem:[#allocation3] sm:$0x3f]  ;;  %vm57_vm0 = vcmask 1043456   ;;  %vm61_vm1 = vcmask 863232   ;;  %v85_v20 = vlaneseq }
  0x27   :  { %v46_v1 = vld [vmem:[#allocation3 + $0x6] sm:$0x3f]  ;;  %v47_v2 = vunpack.c.l.bf16 %v45_v0  ;;  %v48_v3 = vunpack.c.h.bf16 %v45_v0  ;;  %v75_v18 = vld [vmem:[#allocation6] sm:$0xf]  ;;  %v3535_v19 = vmov 0.0   ;;  %vm3536_vm2 = vmmov 0  }
  0x28   :  { %v49_v4 = vunpack.c.l.bf16 %v46_v1  ;;  %v50_v7 = vunpack.c.h.bf16 %v46_v1  ;;  %3157 = vmatprep.subr.mxu0 %v3535_v19  ;;  %3159 = vmatprep.mubr.msk.f32.mxu0 %vm3536_vm2, %v3535_v19  ;;  %v86_v21 = vand.u32 127, %v85_v20  ;;  %v3638_v22 = vshrl.u32 %v85_v20, 7  ;;  %v3042_v33 = vld [vmem:[%s4298_s2] ss:$0 sm:$0xff]  ;;  %v272_v58 = vld [vmem:[#allocation3] sm:$0x3f] }
  0x29   :  { %v53_v5 = vcombine.high %v47_v2, %v47_v2  ;;  %v58_v6 = vsel %vm57_vm0, %v47_v2, 0.0  ;;  %v62_v11 = vsel %vm61_vm1, %v48_v3, 0.0  ;;  %3158 = vmatpush3.msk.msra.mxu0 %vm57_vm0, %v75_v18  ;;  %vm95_vm3 = vcmask 1041409   ;;  %s3543_s2 = smov 127   ;;  %s3544_s15 = smov 110  }
  0x2a   :  { %v54_v8 = vcombine.high %v49_v4, %v49_v4  ;;  %v66_v9 = vsel %vm57_vm0, %v49_v4, 0.0  ;;  %v69_v15 = vsel %vm61_vm1, %v50_v7, 0.0  ;;  %3162 = vmatprep.subr.bf16.mxu0 %v3535_v19  ;;  %v89_v24 = vsub.s32 %v86_v21, %v3638_v22  ;;  %v3681_v63 = vld [vmem:[%s4299_s3] sm:$0x3]  ;;  %v3686_v0 = vld [vmem:[%s4299_s3 + $0x2] sm:$0x3] }
  0x2b   :  { %v59_v10 = vsel %vm57_vm0, %v53_v5, 0.0  ;;  %vm97_vm4 = vcmask 31744   ;;  %v3537_v31 = vmov 2   ;;  %v3538_v32 = vmov 0   ;;  %v3691_v2 = vld [vmem:[%s4299_s3 + $0x4] sm:$0x3] }
  0x2c   :  { %v67_v12 = vsel %vm57_vm0, %v54_v8, 0.0  ;;  %v60_v13 = vadd.f32 %v59_v10, %v58_v6  ;;  %3447 = vset.pattern.permute.xlu0 %v3537_v31  ;;  %3445 = vset.pattern.permute.xlu1 %v3538_v32  ;;  %v3539_v40 = vmov 1966171168   ;;  %v206_v46 = vsub.s32 0, %v3638_v22  ;;  %v3703_v10 = vld [vmem:[%s4299_s3 + $0x6] sm:$0x3] }
  0x2d   :  { %v68_v14 = vadd.f32 %v67_v12, %v66_v9  ;;  %355 = vmatprep.mubr.bf16.mxu1 %v3538_v32  ;;  %v181_v41 = vunpack.c.l.s4 %v3539_v40  ;;  %v3540_v49 = vmov 1983009808   ;;  %v3541_v55 = vmov 3   ;;  %s3545_s3 = smov 116   ;;  %s3546_s24 = smov 124  }
  0x2e   :  { %v63_v16 = vadd.f32 %v62_v11, %v60_v13  ;;  %v276_v50 = vunpack.c.l.s4 %v3540_v49  ;;  %v3542_v56 = vmov 1   ;;  %v285_v61 = vcombine.high %v272_v58, %v272_v58  ;;  %s3547_s26 = smov 109   ;;  %s3548_s27 = smov 112  }
  0x2f   :  { %v70_v17 = vadd.f32 %v69_v15, %v68_v14  ;;  %v182_v42 = vunpack.c.0.s8 %v181_v41  ;;  %v203_v3 = vunpack.c.l.bf16 %v3681_v63  ;;  %v224_v4 = vunpack.c.l.bf16 %v3686_v0  ;;  %s3549_s28 = smov 126   ;;  %s3550_s29 = smov 108  }
  0x30   :  { %64 = vadd.xlane.f32.xlu0 %v63_v16  ;;  %v277_v53 = vunpack.c.0.s8 %v276_v50  ;;  %v239_v5 = vunpack.c.l.bf16 %v3691_v2  ;;  %v254_v13 = vunpack.c.l.bf16 %v3703_v10  ;;  %vm269_vm5 = vcmask 287744   ;;  %s3551_s30 = smov 92   ;;  %s3552_s5 = smov 104  }
  0x31   :  { %v185_v43 = vsub.s32 %v182_v42, %v3638_v22  ;;  %vm307_vm6 = vcmask 1039360   ;;  %vm313_vm7 = vcmask 1041408   ;;  %s3553_s6 = smov 120   ;;  %s3554_s7 = smov 91   ;;  %vm505_vm8 = vcmask 1031168  }
  0x32   :  { %v3656_v57 = vsub.s32 %v277_v53, %v3638_v22  ;;  %s3555_s8 = smov 100   ;;  %s3556_s9 = smov 90   ;;  %vm612_vm9 = vcmask 900096   ;;  %vm719_vm10 = vcmask 891904   ;;  %vm826_vm11 = vcmask 883712  }
  0x33   :  { %vm933_vm12 = vcmask 752640   ;;  %vm1040_vm13 = vcmask 744448   ;;  %vm1147_vm14 = vcmask 736256   ;;  %s3557_s10 = smov 74   ;;  %s3558_s11 = smov 4   ;;  %vm1270_vm15 = vcmask 15360  }
  0x34   :  { %71 = vadd.xlane.f32.xlu0 %v70_v17  ;;  %v3659_v59 = vrot.slane %v272_v58, %v3656_v57  ;;  %v3671_v62 = vrot.slane %v285_v61, %v3656_v57  ;;  %s3559_s12 = smov 2   ;;  %s3560_s0 = smov 38   ;;  %vm1629_vm0 = vcmask 130048   ;;  %vm1631_vm1 = vcmask 261120  }
  0x35   :  { %s3561_s13 = smov 56   ;;  %s3562_s1 = smov 114  }
  0x36   :  { %v3665_v60 = vcombine.high %v3659_v59, %v3659_v59  ;;  %s3563_s14 = smov 20   ;;  %s3565_s16 = smov 76  }
  0x37   :  { %s3566_s17 = smov 58   ;;  %s3567_s18 = smov 40  }
  0x38   :  { %s3568_s19 = smov 22   ;;  %s3571_s20 = smov 16  }
  0x39   :  { %s3572_s21 = smov 48   ;;  %s3573_s22 = smov 64  }
  0x3a   :  { %s3574_s23 = smov 80  }
  0xbd   :  { %v65_v23 = vpop.xlane.xlu0 %64 }
  0xbe   :  { %v73_v25 = vmul.f32 0.00390625, %v65_v23 }
  0xc0   :  { %v90_v28 = vrot.slane %v73_v25, %v89_v24 }
  0xc1   :  { %v72_v26 = vpop.xlane.xlu0 %71 }
  0xc2   :  { %v74_v27 = vmul.f32 0.00390625, %v72_v26 }
  0xc4   :  { %v94_v29 = vrot.slane %v74_v27, %v89_v24 }
  0xc6   :  { %v96_v30 = vsel %vm95_vm3, %v94_v29, %v90_v28  ;;  %vm1635_vm3 = vcmask 523264  }
  0xc7   :  { %3160 = vmatmul.mubr.msk.f32.vlgmr.msra.gmra.mrb[0].mxu0 %vm97_vm4, %v96_v30  ;;  %v1656_v30 = vld [vmem:[#allocation3 + $0x6] sm:$0x3f] }
  0xc8   :  { %3164 = vmatprep.mubr.msk.bf16.mxu0 %vm3536_vm2, %v3535_v19 }
 0x19a   :  { %v169_v34 = vpop.f32.mrb[0].mxu0 }
 0x19b   :  { %v170_v35 = vadd.f32 %v3042_v33, %v169_v34  ;;  %v3161_v36 = vpop.f32.mrb[1].mxu0  ;;  %v1670_v34 = vcombine.high %v1656_v30, %v1656_v30 }
 0x19d   :  { %v3045_v37 = vmul.f32 -1.442695, %v170_v35  ;;  %v3786_v35 = vrot.slane %v1670_v34, %v3656_v57 }
 0x19f   :  { %3455 = vpow2.f32 %v3045_v37  ;;  %v408_v37 = vsel %vm313_vm7, %v3659_v59, 0 }
 0x1a9   :  { %v3456_v38 = vpop.eup %3455 }
 0x1aa   :  { %v176_v39 = vadd.f32 1.0, %v3456_v38  ;;  %v414_v38 = vsel %vm313_vm7, %v3671_v62, 0 }
 0x1ac   :  { %3457 = vrcp.f32 %v176_v39 }
 0x1b6   :  { %v3458_v44 = vpop.eup %3457 }
 0x1b7   :  { %v186_v45 = vrot.slane %v3458_v44, %v185_v43 }
 0x1b9   :  { %v194_v47 = vrot.slane %v186_v45, %v185_v43  ;;  %v187_v48 = vcombine.high %v186_v45, %v186_v45 }
 0x1bb   :  { %v207_v51 = vrot.slane %v194_v47, %v206_v46  ;;  %v201_v52 = vrot.slane %v187_v48, %v185_v43 }
 0x1bd   :  { %241 = vperm.xlu0 %3447, %v207_v51   ;;  %213 = vperm.xlu1 %3445, %v207_v51   ;;  %v3652_v54 = vrot.slane %v201_v52, %v206_v46 }
 0x1c1   :  { %3452 = vset.pattern.permute.xlu0 %v3541_v55  ;;  %3446 = vset.pattern.permute.xlu1 %v3542_v56 }
 0x1c2   :  { %226 = vperm.xlu1 %3446, %v207_v51   ;;  %260 = vperm.xlu0 %3452, %v3652_v54  }
 0x1c6   :  { %3448 = vset.pattern.permute.xlu1 %v3541_v55  ;;  %608 = vrot.lane.b32.xlu0 %v3665_v60, %s3544_s15 }
 0x1c7   :  { %256 = vperm.xlu1 %3448, %v207_v51  }
 0x1cb   :  { %301 = vrot.lane.b32.xlu1 %v3659_v59, %s3543_s2 }
 0x1cc   :  { %3449 = vset.pattern.permute.xlu1 %v3538_v32 }
 0x1cf   :  { %303 = vrot.lane.b32.xlu1 %v3665_v60, %s3543_s2 }
 0x1d3   :  { %305 = vrot.lane.b32.xlu1 %v3671_v62, %s3543_s2 }
 0x1d7   :  { %217 = vperm.xlu1 %3449, %v3652_v54  }
 0x1db   :  { %3450 = vset.pattern.permute.xlu1 %v3542_v56 }
 0x23c   :  { %v214_v1 = vpop.permute.xlu1 %213  ;;  %v242_v6 = vpop.permute.xlu0 %241 }
 0x23d   :  { %v220_v8 = vmul.f32 %v214_v1, %v203_v3  ;;  %v248_v11 = vmul.f32 %v242_v6, %v239_v5 }
 0x241   :  { %v227_v7 = vpop.permute.xlu1 %226  ;;  %v261_v42 = vpop.permute.xlu0 %260 }
 0x242   :  { %v233_v9 = vmul.f32 %v227_v7, %v224_v4  ;;  %v264_v56 = vmul.f32 %v261_v42, %v254_v13 }
 0x244   :  { %v235_v12 = vadd.f32 %v233_v9, %v220_v8 }
 0x245   :  { %v609_v44 = vpop.permute.xlu0 %608 }
 0x246   :  { %v250_v14 = vadd.f32 %v248_v11, %v235_v12  ;;  %v257_v15 = vpop.permute.xlu1 %256 }
 0x247   :  { %v263_v16 = vmul.f32 %v257_v15, %v254_v13 }
 0x249   :  { %v265_v17 = vadd.f32 %v263_v16, %v250_v14 }
 0x24a   :  { %v302_v18 = vpop.permute.xlu1 %301 }
 0x24b   :  { %v267_v20 = vpack.c.bf16 %v265_v17, %v265_v17 }
 0x24d   :  { %270 = vst.msk [vmem:[#allocation2] sm:$0x3] %vm269_vm5, %v267_v20 }
 0x24e   :  { %v304_v21 = vpop.permute.xlu1 %303 }
 0x24f   :  { %v308_v23 = vsel %vm307_vm6, %v302_v18, %v304_v21 }
 0x250   :  { %v315_v25 = vsel %vm313_vm7, %v308_v23, 0 }
 0x252   :  { %v306_v24 = vpop.permute.xlu1 %305 }
 0x253   :  { %v309_v26 = vsel %vm307_vm6, %v304_v21, %v306_v24  ;;  %v321_v27 = vsel %vm313_vm7, %v306_v24, 0 }
 0x254   :  { %v3715_v28 = vld [vmem:[#allocation2] sm:$0x3]  ;;  %3049 = vmatprep.subr.msk.bf16.mxu1 %vm313_vm7, %v309_v26  ;;  %3163 = vmatpush3.bf16.msra.mxu0 %v321_v27 }
 0x255   :  { %v281_v29 = vrot.slane %v3715_v28, %v3656_v57  ;;  %324 = vmatpush1.bf16.msra.mxu1 %v315_v25  ;;  %3168 = vmatprep.subr.bf16.mxu0 %v3535_v19 }
 0x256   :  { %3052 = vmatprep.subr.msk.bf16.mxu1 %vm313_vm7, %v3665_v60  ;;  %v218_v36 = vpop.permute.xlu1 %217 }
 0x257   :  { %604 = vrot.lane.b32.xlu0 %v281_v29, %s3545_s3  ;;  %282 = vrot.lane.b32.xlu1 %v281_v29, %s3546_s24  ;;  %v221_v51 = vmul.f32 %v218_v36, %v203_v3 }
 0x25b   :  { %715 = vrot.lane.b32.xlu0 %v3665_v60, %s3547_s26  ;;  %230 = vperm.xlu1 %3450, %v3652_v54  }
 0x25f   :  { %711 = vrot.lane.b32.xlu0 %v281_v29, %s3548_s27  ;;  %499 = vrot.lane.b32.xlu1 %v3659_v59, %s3549_s28 }
 0x260   :  { %3451 = vset.pattern.permute.xlu1 %v3537_v31  ;;  %v3756_v31 = vrot.slane %v1656_v30, %v3656_v57 }
 0x262   :  { %v3763_v33 = vcombine.high %v3756_v31, %v3756_v31 }
 0x263   :  { %822 = vrot.lane.b32.xlu0 %v3665_v60, %s3550_s29  ;;  %501 = vrot.lane.b32.xlu1 %v3665_v60, %s3549_s28 }
 0x267   :  { %818 = vrot.lane.b32.xlu0 %v281_v29, %s3550_s29  ;;  %503 = vrot.lane.b32.xlu1 %v3671_v62, %s3549_s28 }
 0x26b   :  { %929 = vrot.lane.b32.xlu0 %v3665_v60, %s3551_s30  ;;  %245 = vperm.xlu1 %3451, %v3652_v54  }
 0x26f   :  { %925 = vrot.lane.b32.xlu0 %v281_v29, %s3552_s5  ;;  %497 = vrot.lane.b32.xlu1 %v281_v29, %s3553_s6 }
 0x273   :  { %1036 = vrot.lane.b32.xlu0 %v3665_v60, %s3554_s7  ;;  %606 = vrot.lane.b32.xlu1 %v3659_v59, %s3544_s15 }
 0x277   :  { %1032 = vrot.lane.b32.xlu0 %v281_v29, %s3555_s8  ;;  %610 = vrot.lane.b32.xlu1 %v3671_v62, %s3544_s15 }
 0x27b   :  { %1143 = vrot.lane.b32.xlu0 %v3665_v60, %s3556_s9  ;;  %713 = vrot.lane.b32.xlu1 %v3659_v59, %s3547_s26 }
 0x27f   :  { %1139 = vrot.lane.b32.xlu0 %v281_v29, %s3532_s25  ;;  %717 = vrot.lane.b32.xlu1 %v3671_v62, %s3547_s26 }
 0x283   :  { %820 = vrot.lane.b32.xlu1 %v3659_v59, %s3550_s29  ;;  %1688 = vrot.lane.b32.xlu0 %v3763_v33, %s3543_s2 }
 0x287   :  { %824 = vrot.lane.b32.xlu1 %v3671_v62, %s3550_s29 }
 0x28b   :  { %927 = vrot.lane.b32.xlu1 %v3659_v59, %s3551_s30 }
 0x28f   :  { %931 = vrot.lane.b32.xlu1 %v3671_v62, %s3551_s30 }
 0x293   :  { %1034 = vrot.lane.b32.xlu1 %v3659_v59, %s3554_s7 }
 0x297   :  { %1038 = vrot.lane.b32.xlu1 %v3671_v62, %s3554_s7 }
 0x29b   :  { %1141 = vrot.lane.b32.xlu1 %v3659_v59, %s3556_s9 }
 0x29f   :  { %1145 = vrot.lane.b32.xlu1 %v3671_v62, %s3556_s9 }
 0x2a3   :  { %1686 = vrot.lane.b32.xlu1 %v3756_v31, %s3543_s2 }
 0x2a7   :  { %1690 = vrot.lane.b32.xlu1 %v3786_v35, %s3543_s2  ;;  %s3564_s2 = smov 94  }
 0x2ab   :  { %1882 = vrot.lane.b32.xlu1 %v3756_v31, %s3549_s28 }
 0x2af   :  { %1886 = vrot.lane.b32.xlu1 %v3786_v35, %s3549_s28 }
 0x2b3   :  { %1988 = vrot.lane.b32.xlu1 %v3756_v31, %s3544_s15 }
 0x2b7   :  { %1992 = vrot.lane.b32.xlu1 %v3786_v35, %s3544_s15 }
 0x2bb   :  { %2094 = vrot.lane.b32.xlu1 %v3756_v31, %s3547_s26 }
 0x2bf   :  { %2098 = vrot.lane.b32.xlu1 %v3786_v35, %s3547_s26 }
 0x2c3   :  { %2200 = vrot.lane.b32.xlu1 %v3756_v31, %s3550_s29 }
 0x2c7   :  { %2204 = vrot.lane.b32.xlu1 %v3786_v35, %s3550_s29 }
 0x2c9   :  { %v283_v39 = vpop.permute.xlu1 %282  ;;  %v605_v52 = vpop.permute.xlu0 %604 }
 0x2ca   :  { %3050 = vmatmul.mubr.msk.bf16.vlgmr.msra.gmra.mrb[0].mxu1 %vm97_vm4, %v283_v39  ;;  %3165 = vmatmul.mubr.msk.bf16.vlgmr.msra.gmra.mrb[4].mxu0 %vm97_vm4, %v283_v39 }
 0x2cb   :  { %417 = vmatpush1.bf16.msra.mxu1 %v408_v37  ;;  %3169 = vmatpush3.bf16.msra.mxu0 %v414_v38 }
 0x2cc   :  { %448 = vmatprep.mubr.bf16.mxu1 %v3538_v32  ;;  %3170 = vmatprep.mubr.msk.bf16.mxu0 %vm3536_vm2, %v3535_v19 }
 0x2cd   :  { %3174 = vmatprep.subr.bf16.mxu0 %v3535_v19  ;;  %2306 = vrot.lane.b32.xlu1 %v3756_v31, %s3551_s30  ;;  %v716_v60 = vpop.permute.xlu0 %715 }
 0x2d1   :  { %2310 = vrot.lane.b32.xlu1 %v3786_v35, %s3551_s30  ;;  %v712_v1 = vpop.permute.xlu0 %711 }
 0x2d5   :  { %2412 = vrot.lane.b32.xlu1 %v3756_v31, %s3554_s7  ;;  %v823_v8 = vpop.permute.xlu0 %822 }
 0x2d6   :  { %3053 = vmatmul.mubr.msk.bf16.vlgmr.msra.gmra.mrb[0].mxu1 %vm97_vm4, %v3715_v28  ;;  %3171 = vmatmul.mubr.msk.bf16.vlgmr.msra.gmra.mrb[4].mxu0 %vm97_vm4, %v3715_v28 }
 0x2d7   :  { %552 = vmatprep.mubr.bf16.mxu1 %v3538_v32  ;;  %3176 = vmatprep.mubr.msk.bf16.mxu0 %vm3536_vm2, %v3535_v19 }
 0x2d9   :  { %2416 = vrot.lane.b32.xlu1 %v3786_v35, %s3554_s7  ;;  %v819_v15 = vpop.permute.xlu0 %818 }
 0x2da   :  { %v231_v40 = vpop.permute.xlu1 %230 }
 0x2db   :  { %v234_v47 = vmul.f32 %v231_v40, %v224_v4 }
 0x2dd   :  { %2518 = vrot.lane.b32.xlu1 %v3756_v31, %s3556_s9  ;;  %v236_v54 = vadd.f32 %v234_v47, %v221_v51  ;;  %v930_v20 = vpop.permute.xlu0 %929 }
 0x2de   :  { %v500_v41 = vpop.permute.xlu1 %499 }
 0x2e1   :  { %2522 = vrot.lane.b32.xlu1 %v3786_v35, %s3556_s9  ;;  %v926_v26 = vpop.permute.xlu0 %925 }
 0x2e2   :  { %v502_v43 = vpop.permute.xlu1 %501 }
 0x2e3   :  { %v506_v45 = vsel %vm505_vm8, %v500_v41, %v502_v43 }
 0x2e4   :  { %v512_v50 = vsel %vm313_vm7, %v506_v45, 0 }
 0x2e5   :  { %v1037_v37 = vpop.permute.xlu0 %1036 }
 0x2e6   :  { %v504_v46 = vpop.permute.xlu1 %503 }
 0x2e7   :  { %v507_v48 = vsel %vm505_vm8, %v502_v43, %v504_v46  ;;  %v518_v49 = vsel %vm313_vm7, %v504_v46, 0 }
 0x2e8   :  { %3055 = vmatprep.subr.msk.bf16.mxu1 %vm313_vm7, %v507_v48  ;;  %3175 = vmatpush3.bf16.msra.mxu0 %v518_v49 }
 0x2e9   :  { %521 = vmatpush1.bf16.msra.mxu1 %v512_v50  ;;  %3180 = vmatprep.subr.bf16.mxu0 %v3535_v19  ;;  %v1033_v40 = vpop.permute.xlu0 %1032 }
 0x2ea   :  { %v246_v53 = vpop.permute.xlu1 %245 }
 0x2eb   :  { %v249_v55 = vmul.f32 %v246_v53, %v239_v5 }
 0x2ed   :  { %v251_v58 = vadd.f32 %v249_v55, %v236_v54  ;;  %v1144_v46 = vpop.permute.xlu0 %1143 }
 0x2ee   :  { %v498_v59 = vpop.permute.xlu1 %497 }
 0x2ef   :  { %v266_v61 = vadd.f32 %v264_v56, %v251_v58  ;;  %3056 = vmatmul.mubr.msk.bf16.vlgmr.msra.gmra.mrb[0].mxu1 %vm97_vm4, %v498_v59  ;;  %3177 = vmatmul.mubr.msk.bf16.vlgmr.msra.gmra.mrb[4].mxu0 %vm97_vm4, %v498_v59 }
 0x2f0   :  { %3182 = vmatprep.mubr.msk.bf16.mxu0 %vm3536_vm2, %v3535_v19  ;;  %659 = vmatprep.mubr.bf16.mxu1 %v3538_v32 }
 0x2f1   :  { %v268_v62 = vpack.c.bf16 %v266_v61, %v266_v61  ;;  %v1140_v49 = vpop.permute.xlu0 %1139  ;;  %v1791_v61 = vsel %vm313_vm7, %v3756_v31, 0 }
 0x2f2   :  { %v607_v63 = vpop.permute.xlu1 %606 }
 0x2f3   :  { %271 = vst.msk [vmem:[#allocation2 + $0x2] sm:$0x3] %vm269_vm5, %v268_v62  ;;  %v613_v0 = vsel %vm612_vm9, %v607_v63, %v609_v44  ;;  %v1797_v62 = vsel %vm313_vm7, %v3786_v35, 0  ;;  %vm1639_vm5 = vcmask 785408  }
 0x2f4   :  { %v619_v2 = vsel %vm313_vm7, %v613_v0, 0 }
 0x2f6   :  { %v611_v3 = vpop.permute.xlu1 %610 }
 0x2f7   :  { %v614_v4 = vsel %vm612_vm9, %v609_v44, %v611_v3  ;;  %v625_v5 = vsel %vm313_vm7, %v611_v3, 0 }
 0x2f8   :  { %3058 = vmatprep.subr.msk.bf16.mxu1 %vm313_vm7, %v614_v4  ;;  %3181 = vmatpush3.bf16.msra.mxu0 %v625_v5 }
 0x2f9   :  { %628 = vmatpush1.bf16.msra.mxu1 %v619_v2  ;;  %3186 = vmatprep.subr.bf16.mxu0 %v3535_v19 }
 0x2fa   :  { %v3861_v6 = vld [vmem:[#allocation2 + $0x2] sm:$0x3]  ;;  %v714_v7 = vpop.permute.xlu1 %713 }
 0x2fb   :  { %3183 = vmatmul.mubr.msk.bf16.vlgmr.msra.gmra.mrb[4].mxu0 %vm97_vm4, %v605_v52  ;;  %v3866_v9 = vrot.slane %v3861_v6, %v3656_v57  ;;  %v720_v10 = vsel %vm719_vm10, %v714_v7, %v716_v60 }
 0x2fc   :  { %3059 = vmatmul.mubr.msk.bf16.vlgmr.msra.gmra.mrb[0].mxu1 %vm97_vm4, %v605_v52  ;;  %3188 = vmatprep.mubr.msk.bf16.mxu0 %vm3536_vm2, %v3535_v19  ;;  %v726_v11 = vsel %vm313_vm7, %v720_v10, 0  ;;  %v1689_v52 = vpop.permute.xlu0 %1688 }
 0x2fd   :  { %1667 = vrot.lane.b32.xlu0 %v3866_v9, %s3546_s24  ;;  %766 = vmatprep.mubr.bf16.mxu1 %v3538_v32 }
 0x2fe   :  { %v718_v12 = vpop.permute.xlu1 %717 }
 0x2ff   :  { %v721_v13 = vsel %vm719_vm10, %v716_v60, %v718_v12  ;;  %v732_v14 = vsel %vm313_vm7, %v718_v12, 0 }
 0x300   :  { %3061 = vmatprep.subr.msk.bf16.mxu1 %vm313_vm7, %v721_v13  ;;  %3187 = vmatpush3.bf16.msra.mxu0 %v732_v14 }
 0x301   :  { %1884 = vrot.lane.b32.xlu0 %v3763_v33, %s3549_s28  ;;  %735 = vmatpush1.bf16.msra.mxu1 %v726_v11 }
 0x302   :  { %v821_v16 = vpop.permute.xlu1 %820  ;;  %3192 = vmatprep.subr.bf16.mxu0 %v3535_v19 }
 0x303   :  { %v827_v17 = vsel %vm826_vm11, %v821_v16, %v823_v8 }
 0x304   :  { %v833_v21 = vsel %vm313_vm7, %v827_v17, 0 }
 0x305   :  { %1880 = vrot.lane.b32.xlu0 %v3866_v9, %s3553_s6 }
 0x306   :  { %v825_v18 = vpop.permute.xlu1 %824 }
 0x307   :  { %3189 = vmatmul.mubr.msk.bf16.vlgmr.msra.gmra.mrb[4].mxu0 %vm97_vm4, %v712_v1  ;;  %v828_v23 = vsel %vm826_vm11, %v823_v8, %v825_v18  ;;  %v839_v24 = vsel %vm313_vm7, %v825_v18, 0 }
 0x308   :  { %3062 = vmatmul.mubr.msk.bf16.vlgmr.msra.gmra.mrb[0].mxu1 %vm97_vm4, %v712_v1  ;;  %3064 = vmatprep.subr.msk.bf16.mxu1 %vm313_vm7, %v828_v23 }
 0x309   :  { %1990 = vrot.lane.b32.xlu0 %v3763_v33, %s3544_s15  ;;  %3193 = vmatpush3.bf16.msra.mxu0 %v839_v24 }
 0x30a   :  { %842 = vmatpush1.bf16.msra.mxu1 %v833_v21  ;;  %3194 = vmatprep.mubr.msk.bf16.mxu0 %vm3536_vm2, %v3535_v19  ;;  %v928_v25 = vpop.permute.xlu1 %927 }
 0x30b   :  { %873 = vmatprep.mubr.bf16.mxu1 %v3538_v32  ;;  %3198 = vmatprep.subr.bf16.mxu0 %v3535_v19  ;;  %v934_v28 = vsel %vm933_vm12, %v928_v25, %v930_v20 }
 0x30c   :  { %v940_v34 = vsel %vm313_vm7, %v934_v28, 0 }
 0x30d   :  { %1986 = vrot.lane.b32.xlu0 %v3866_v9, %s3545_s3 }
 0x30e   :  { %v932_v27 = vpop.permute.xlu1 %931 }
 0x30f   :  { %v935_v29 = vsel %vm933_vm12, %v930_v20, %v932_v27  ;;  %v946_v30 = vsel %vm313_vm7, %v932_v27, 0 }
 0x310   :  { %3067 = vmatprep.subr.msk.bf16.mxu1 %vm313_vm7, %v935_v29 }
 0x311   :  { %2096 = vrot.lane.b32.xlu0 %v3763_v33, %s3547_s26 }
 0x312   :  { %v1035_v36 = vpop.permute.xlu1 %1034 }
 0x313   :  { %3195 = vmatmul.mubr.msk.bf16.vlgmr.msra.gmra.mrb[4].mxu0 %vm97_vm4, %v819_v15  ;;  %v1041_v42 = vsel %vm1040_vm13, %v1035_v36, %v1037_v37 }
 0x314   :  { %3065 = vmatmul.mubr.msk.bf16.vlgmr.msra.gmra.mrb[0].mxu1 %vm97_vm4, %v819_v15  ;;  %3199 = vmatpush3.bf16.msra.mxu0 %v946_v30  ;;  %v1047_v44 = vsel %vm313_vm7, %v1041_v42, 0 }
 0x315   :  { %2092 = vrot.lane.b32.xlu0 %v3866_v9, %s3548_s27  ;;  %949 = vmatpush1.bf16.msra.mxu1 %v940_v34 }
 0x316   :  { %3200 = vmatprep.mubr.msk.bf16.mxu0 %vm3536_vm2, %v3535_v19  ;;  %980 = vmatprep.mubr.bf16.mxu1 %v3538_v32  ;;  %v1039_v38 = vpop.permute.xlu1 %1038 }
 0x317   :  { %3204 = vmatprep.subr.bf16.mxu0 %v3535_v19  ;;  %v1042_v39 = vsel %vm1040_vm13, %v1037_v37, %v1039_v38  ;;  %v1053_v43 = vsel %vm313_vm7, %v1039_v38, 0 }
 0x318   :  { %3070 = vmatprep.subr.msk.bf16.mxu1 %vm313_vm7, %v1042_v39 }
 0x319   :  { %2202 = vrot.lane.b32.xlu0 %v3763_v33, %s3550_s29 }
 0x31a   :  { %v1142_v41 = vpop.permute.xlu1 %1141 }
 0x31b   :  { %v1148_v50 = vsel %vm1147_vm14, %v1142_v41, %v1144_v46 }
 0x31c   :  { %v1154_v54 = vsel %vm313_vm7, %v1148_v50, 0 }
 0x31d   :  { %2198 = vrot.lane.b32.xlu0 %v3866_v9, %s3550_s29 }
 0x31e   :  { %v1146_v45 = vpop.permute.xlu1 %1145 }
 0x31f   :  { %3201 = vmatmul.mubr.msk.bf16.vlgmr.msra.gmra.mrb[4].mxu0 %vm97_vm4, %v926_v26  ;;  %v1149_v47 = vsel %vm1147_vm14, %v1144_v46, %v1146_v45  ;;  %v1160_v51 = vsel %vm313_vm7, %v1146_v45, 0 }
 0x320   :  { %3068 = vmatmul.mubr.msk.bf16.vlgmr.msra.gmra.mrb[0].mxu1 %vm97_vm4, %v926_v26  ;;  %3205 = vmatpush3.bf16.msra.mxu0 %v1053_v43 }
 0x321   :  { %2308 = vrot.lane.b32.xlu0 %v3763_v33, %s3551_s30  ;;  %1056 = vmatpush1.bf16.msra.mxu1 %v1047_v44 }
 0x322   :  { %3206 = vmatprep.mubr.msk.bf16.mxu0 %vm3536_vm2, %v3535_v19  ;;  %1087 = vmatprep.mubr.bf16.mxu1 %v3538_v32  ;;  %v1687_v48 = vpop.permute.xlu1 %1686 }
 0x323   :  { %3210 = vmatprep.subr.bf16.mxu0 %v3535_v19  ;;  %3073 = vmatprep.subr.msk.bf16.mxu1 %vm313_vm7, %v1149_v47  ;;  %v1692_v56 = vsel %vm307_vm6, %v1687_v48, %v1689_v52 }
 0x324   :  { %v1698_v59 = vsel %vm313_vm7, %v1692_v56, 0 }
 0x325   :  { %2304 = vrot.lane.b32.xlu0 %v3866_v9, %s3552_s5 }
 0x326   :  { %v1691_v53 = vpop.permute.xlu1 %1690 }
 0x327   :  { %v1693_v55 = vsel %vm307_vm6, %v1689_v52, %v1691_v53  ;;  %v1704_v58 = vsel %vm313_vm7, %v1691_v53, 0  ;;  %vm1641_vm6 = vcmask 916480  }
 0x329   :  { %2414 = vrot.lane.b32.xlu0 %v3763_v33, %s3554_s7 }
 0x32a   :  { %v1883_v60 = vpop.permute.xlu1 %1882 }
 0x32b   :  { %3207 = vmatmul.mubr.msk.bf16.vlgmr.msra.gmra.mrb[4].mxu0 %vm97_vm4, %v1033_v40 }
 0x32c   :  { %3071 = vmatmul.mubr.msk.bf16.vlgmr.msra.gmra.mrb[0].mxu1 %vm97_vm4, %v1033_v40  ;;  %3211 = vmatpush3.bf16.msra.mxu0 %v1160_v51 }
 0x32d   :  { %2410 = vrot.lane.b32.xlu0 %v3866_v9, %s3555_s8  ;;  %1163 = vmatpush1.bf16.msra.mxu1 %v1154_v54 }
 0x32e   :  { %3212 = vmatprep.mubr.msk.bf16.mxu0 %vm3536_vm2, %v3535_v19  ;;  %1194 = vmatprep.mubr.bf16.mxu1 %v3538_v32  ;;  %v1887_v0 = vpop.permute.xlu1 %1886 }
 0x32f   :  { %3084 = vmatprep.subr.msk.bf16.mxu1 %vm313_vm7, %v1693_v55  ;;  %3216 = vmatprep.subr.bf16.mxu0 %v3535_v19  ;;  %v1900_v5 = vsel %vm313_vm7, %v1887_v0, 0 }
 0x331   :  { %2520 = vrot.lane.b32.xlu0 %v3763_v33, %s3556_s9 }
 0x332   :  { %v1989_v31 = vpop.permute.xlu1 %1988 }
 0x335   :  { %2516 = vrot.lane.b32.xlu0 %v3866_v9, %s3532_s25 }
 0x336   :  { %v1993_v3 = vpop.permute.xlu1 %1992 }
 0x337   :  { %3213 = vmatmul.mubr.msk.bf16.vlgmr.msra.gmra.mrb[4].mxu0 %vm97_vm4, %v1140_v49  ;;  %v2006_v13 = vsel %vm313_vm7, %v1993_v3, 0 }
 0x338   :  { %3074 = vmatmul.mubr.msk.bf16.vlgmr.msra.gmra.mrb[0].mxu1 %vm97_vm4, %v1140_v49  ;;  %3217 = vmatpush3.bf16.msra.mxu0 %v1704_v58 }
 0x339   :  { %1707 = vmatpush1.bf16.msra.mxu1 %v1698_v59  ;;  %1738 = vmatprep.mubr.bf16.mxu1 %v3538_v32 }
 0x33a   :  { %3218 = vmatprep.mubr.msk.bf16.mxu0 %vm3536_vm2, %v3535_v19  ;;  %3087 = vmatprep.subr.msk.bf16.mxu1 %vm313_vm7, %v3763_v33  ;;  %v2095_v9 = vpop.permute.xlu1 %2094 }
 0x33b   :  { %3222 = vmatprep.subr.bf16.mxu0 %v3535_v19 }
 0x33e   :  { %v2099_v12 = vpop.permute.xlu1 %2098 }
 0x33f   :  { %v2112_v23 = vsel %vm313_vm7, %v2099_v12, 0 }
 0x342   :  { %v2201_v16 = vpop.permute.xlu1 %2200 }
 0x346   :  { %v2205_v20 = vpop.permute.xlu1 %2204 }
 0x347   :  { %v2218_v34 = vsel %vm313_vm7, %v2205_v20, 0 }
 0x34a   :  { %v2307_v26 = vpop.permute.xlu1 %2306 }
 0x34e   :  { %v2311_v29 = vpop.permute.xlu1 %2310 }
 0x34f   :  { %v2324_v43 = vsel %vm313_vm7, %v2311_v29, 0 }
 0x352   :  { %v2413_v38 = vpop.permute.xlu1 %2412 }
 0x356   :  { %v2417_v41 = vpop.permute.xlu1 %2416 }
 0x357   :  { %v2430_v51 = vsel %vm313_vm7, %v2417_v41, 0 }
 0x35a   :  { %v2519_v46 = vpop.permute.xlu1 %2518 }
 0x35e   :  { %v2523_v49 = vpop.permute.xlu1 %2522 }
 0x35f   :  { %v2536_v56 = vsel %vm313_vm7, %v2523_v49, 0 }
 0x36f   :  { %v1668_v63 = vpop.permute.xlu0 %1667 }
 0x370   :  { %3085 = vmatmul.mubr.msk.bf16.vlgmr.msra.gmra.mrb[4].mxu1 %vm97_vm4, %v1668_v63  ;;  %3219 = vmatmul.mubr.msk.bf16.vlgmr.msra.gmra.mrb[8].mxu0 %vm97_vm4, %v1668_v63 }
 0x371   :  { %1800 = vmatpush1.bf16.msra.mxu1 %v1791_v61  ;;  %3223 = vmatpush3.bf16.msra.mxu0 %v1797_v62 }
 0x372   :  { %1831 = vmatprep.mubr.bf16.mxu1 %v3538_v32  ;;  %3224 = vmatprep.mubr.msk.bf16.mxu0 %vm3536_vm2, %v3535_v19 }
 0x373   :  { %v1885_v33 = vpop.permute.xlu0 %1884  ;;  %3228 = vmatprep.subr.bf16.mxu0 %v3535_v19 }
 0x374   :  { %v1889_v1 = vsel %vm505_vm8, %v1885_v33, %v1887_v0  ;;  %v1888_v35 = vsel %vm505_vm8, %v1883_v60, %v1885_v33 }
 0x375   :  { %3090 = vmatprep.subr.msk.bf16.mxu1 %vm313_vm7, %v1889_v1  ;;  %v1894_v4 = vsel %vm313_vm7, %v1888_v35, 0 }
 0x377   :  { %v1881_v2 = vpop.permute.xlu0 %1880 }
 0x37b   :  { %v1991_v7 = vpop.permute.xlu0 %1990 }
 0x37c   :  { %3088 = vmatmul.mubr.msk.bf16.vlgmr.msra.gmra.mrb[4].mxu1 %vm97_vm4, %v3861_v6  ;;  %3225 = vmatmul.mubr.msk.bf16.vlgmr.msra.gmra.mrb[8].mxu0 %vm97_vm4, %v3861_v6  ;;  %v1995_v8 = vsel %vm612_vm9, %v1991_v7, %v1993_v3  ;;  %v1994_v11 = vsel %vm612_vm9, %v1989_v31, %v1991_v7 }
 0x37d   :  { %1903 = vmatpush1.bf16.msra.mxu1 %v1894_v4  ;;  %3229 = vmatpush3.bf16.msra.mxu0 %v1900_v5  ;;  %v2000_v6 = vsel %vm313_vm7, %v1994_v11, 0 }
 0x37e   :  { %1934 = vmatprep.mubr.bf16.mxu1 %v3538_v32  ;;  %3230 = vmatprep.mubr.msk.bf16.mxu0 %vm3536_vm2, %v3535_v19 }
 0x37f   :  { %3093 = vmatprep.subr.msk.bf16.mxu1 %vm313_vm7, %v1995_v8  ;;  %3234 = vmatprep.subr.bf16.mxu0 %v3535_v19  ;;  %v1987_v10 = vpop.permute.xlu0 %1986 }
 0x383   :  { %v2097_v14 = vpop.permute.xlu0 %2096 }
 0x384   :  { %v2101_v15 = vsel %vm719_vm10, %v2097_v14, %v2099_v12  ;;  %v2100_v18 = vsel %vm719_vm10, %v2095_v9, %v2097_v14 }
 0x385   :  { %v2106_v21 = vsel %vm313_vm7, %v2100_v18, 0 }
 0x387   :  { %v2093_v17 = vpop.permute.xlu0 %2092 }
 0x388   :  { %3091 = vmatmul.mubr.msk.bf16.vlgmr.msra.gmra.mrb[4].mxu1 %vm97_vm4, %v1881_v2  ;;  %3231 = vmatmul.mubr.msk.bf16.vlgmr.msra.gmra.mrb[8].mxu0 %vm97_vm4, %v1881_v2 }
 0x389   :  { %2009 = vmatpush1.bf16.msra.mxu1 %v2000_v6  ;;  %3235 = vmatpush3.bf16.msra.mxu0 %v2006_v13 }
 0x38a   :  { %2040 = vmatprep.mubr.bf16.mxu1 %v3538_v32  ;;  %3236 = vmatprep.mubr.msk.bf16.mxu0 %vm3536_vm2, %v3535_v19 }
 0x38b   :  { %3096 = vmatprep.subr.msk.bf16.mxu1 %vm313_vm7, %v2101_v15  ;;  %3240 = vmatprep.subr.bf16.mxu0 %v3535_v19  ;;  %v2203_v24 = vpop.permute.xlu0 %2202 }
 0x38c   :  { %v2207_v25 = vsel %vm826_vm11, %v2203_v24, %v2205_v20  ;;  %v2206_v28 = vsel %vm826_vm11, %v2201_v16, %v2203_v24 }
 0x38d   :  { %v2212_v30 = vsel %vm313_vm7, %v2206_v28, 0 }
 0x38f   :  { %v2199_v27 = vpop.permute.xlu0 %2198 }
 0x393   :  { %v2309_v36 = vpop.permute.xlu0 %2308 }
 0x394   :  { %3094 = vmatmul.mubr.msk.bf16.vlgmr.msra.gmra.mrb[4].mxu1 %vm97_vm4, %v1987_v10  ;;  %3237 = vmatmul.mubr.msk.bf16.vlgmr.msra.gmra.mrb[8].mxu0 %vm97_vm4, %v1987_v10  ;;  %v2313_v37 = vsel %vm933_vm12, %v2309_v36, %v2311_v29  ;;  %v2312_v40 = vsel %vm933_vm12, %v2307_v26, %v2309_v36 }
 0x395   :  { %2115 = vmatpush1.bf16.msra.mxu1 %v2106_v21  ;;  %3241 = vmatpush3.bf16.msra.mxu0 %v2112_v23  ;;  %v2318_v42 = vsel %vm313_vm7, %v2312_v40, 0 }
 0x396   :  { %2146 = vmatprep.mubr.bf16.mxu1 %v3538_v32  ;;  %3242 = vmatprep.mubr.msk.bf16.mxu0 %vm3536_vm2, %v3535_v19 }
 0x397   :  { %3099 = vmatprep.subr.msk.bf16.mxu1 %vm313_vm7, %v2207_v25  ;;  %3246 = vmatprep.subr.bf16.mxu0 %v3535_v19  ;;  %v2305_v39 = vpop.permute.xlu0 %2304 }
 0x39b   :  { %v2415_v44 = vpop.permute.xlu0 %2414 }
 0x39c   :  { %v2419_v45 = vsel %vm1040_vm13, %v2415_v44, %v2417_v41  ;;  %v2418_v48 = vsel %vm1040_vm13, %v2413_v38, %v2415_v44 }
 0x39d   :  { %v2424_v50 = vsel %vm313_vm7, %v2418_v48, 0 }
 0x39f   :  { %v2411_v47 = vpop.permute.xlu0 %2410 }
 0x3a0   :  { %3097 = vmatmul.mubr.msk.bf16.vlgmr.msra.gmra.mrb[4].mxu1 %vm97_vm4, %v2093_v17  ;;  %3243 = vmatmul.mubr.msk.bf16.vlgmr.msra.gmra.mrb[8].mxu0 %vm97_vm4, %v2093_v17  ;;  %v3569_v17 = vmov 1934713408  }
 0x3a1   :  { %2221 = vmatpush1.bf16.msra.mxu1 %v2212_v30  ;;  %3247 = vmatpush3.bf16.msra.mxu0 %v2218_v34  ;;  %v1336_v18 = vunpack.c.l.s4 %v3569_v17 }
 0x3a2   :  { %2252 = vmatprep.mubr.bf16.mxu1 %v3538_v32  ;;  %3248 = vmatprep.mubr.msk.bf16.mxu0 %vm3536_vm2, %v3535_v19 }
 0x3a3   :  { %3102 = vmatprep.subr.msk.bf16.mxu1 %vm313_vm7, %v2313_v37  ;;  %3252 = vmatprep.subr.bf16.mxu0 %v3535_v19  ;;  %v2521_v52 = vpop.permute.xlu0 %2520  ;;  %v1337_v28 = vunpack.c.0.s8 %v1336_v18 }
 0x3a4   :  { %v2525_v53 = vsel %vm1147_vm14, %v2521_v52, %v2523_v49  ;;  %v2524_v54 = vsel %vm1147_vm14, %v2519_v46, %v2521_v52 }
 0x3a5   :  { %v2530_v55 = vsel %vm313_vm7, %v2524_v54, 0  ;;  %v4107_v38 = vsub.s32 %v1337_v28, %v3638_v22 }
 0x3a7   :  { %v2517_v58 = vpop.permute.xlu0 %2516 }
 0x3ac   :  { %3100 = vmatmul.mubr.msk.bf16.vlgmr.msra.gmra.mrb[4].mxu1 %vm97_vm4, %v2199_v27  ;;  %3249 = vmatmul.mubr.msk.bf16.vlgmr.msra.gmra.mrb[8].mxu0 %vm97_vm4, %v2199_v27 }
 0x3ad   :  { %2327 = vmatpush1.bf16.msra.mxu1 %v2318_v42  ;;  %3253 = vmatpush3.bf16.msra.mxu0 %v2324_v43 }
 0x3ae   :  { %2358 = vmatprep.mubr.bf16.mxu1 %v3538_v32  ;;  %3254 = vmatprep.mubr.msk.bf16.mxu0 %vm3536_vm2, %v3535_v19 }
 0x3af   :  { %3105 = vmatprep.subr.msk.bf16.mxu1 %vm313_vm7, %v2419_v45  ;;  %3258 = vmatprep.subr.bf16.mxu0 %v3535_v19 }
 0x3b8   :  { %3103 = vmatmul.mubr.msk.bf16.vlgmr.msra.gmra.mrb[4].mxu1 %vm97_vm4, %v2305_v39  ;;  %3255 = vmatmul.mubr.msk.bf16.vlgmr.msra.gmra.mrb[8].mxu0 %vm97_vm4, %v2305_v39 }
 0x3b9   :  { %2433 = vmatpush1.bf16.msra.mxu1 %v2424_v50  ;;  %3259 = vmatpush3.bf16.msra.mxu0 %v2430_v51 }
 0x3ba   :  { %2464 = vmatprep.mubr.bf16.mxu1 %v3538_v32  ;;  %3260 = vmatprep.mubr.msk.bf16.mxu0 %vm3536_vm2, %v3535_v19 }
 0x3bb   :  { %3108 = vmatprep.subr.msk.bf16.mxu1 %vm313_vm7, %v2525_v53  ;;  %3264 = vmatprep.subr.bf16.mxu0 %v3535_v19 }
 0x3c4   :  { %3106 = vmatmul.mubr.msk.bf16.vlgmr.msra.gmra.mrb[4].mxu1 %vm97_vm4, %v2411_v47  ;;  %3261 = vmatmul.mubr.msk.bf16.vlgmr.msra.gmra.mrb[8].mxu0 %vm97_vm4, %v2411_v47 }
 0x3c5   :  { %2539 = vmatpush1.bf16.msra.mxu1 %v2530_v55  ;;  %3265 = vmatpush3.bf16.msra.mxu0 %v2536_v56 }
 0x3c6   :  { %2570 = vmatprep.mubr.bf16.mxu1 %v3538_v32  ;;  %3266 = vmatprep.mubr.msk.bf16.mxu0 %vm3536_vm2, %v3535_v19  ;;  %vm1633_vm2 = vcmask 392192  }
 0x3d0   :  { %3109 = vmatmul.mubr.msk.bf16.vlgmr.msra.gmra.mrb[4].mxu1 %vm97_vm4, %v2517_v58  ;;  %3267 = vmatmul.mubr.msk.bf16.vlgmr.msra.gmra.mrb[8].mxu0 %vm97_vm4, %v2517_v58 }
 0x40a   :  { %v1237_v59 = vpop.f32.mrb[4].mxu0 }
 0x40b   :  { %v4055_v60 = vpop.f32.mrb[0].mxu1  ;;  %v3214_v61 = vpop.f32.mrb[5].mxu0 }
 0x40c   :  { %1250 = vrot.lane.b32.xlu0 %v4055_v60, %s3551_s30  ;;  %1247 = vrot.lane.b32.xlu1 %v4055_v60, %s3544_s15  ;;  %v1198_v62 = vpop.f32.mrb[1].mxu1  ;;  %v1240_v32 = vpop.f32.mrb[6].mxu0 }
 0x40d   :  { %v1200_v63 = vpop.f32.mrb[2].mxu1  ;;  %v3215_v0 = vpop.f32.mrb[7].mxu0 }
 0x40e   :  { %v1201_v33 = vpop.f32.mrb[3].mxu1 }
 0x410   :  { %1253 = vrot.lane.b32.xlu1 %v4055_v60, %s3557_s10  ;;  %1294 = vrot.lane.b32.xlu0 %v1237_v59, %s3558_s11 }
 0x414   :  { %1266 = vrot.lane.b32.xlu1 %v4055_v60, %s3559_s12  ;;  %1259 = vrot.lane.b32.xlu0 %v4055_v60, %s3560_s0 }
 0x418   :  { %1256 = vrot.lane.b32.xlu1 %v4055_v60, %s3561_s13  ;;  %1298 = vrot.lane.b32.xlu0 %v1237_v59, %s3562_s1 }
 0x41c   :  { %1262 = vrot.lane.b32.xlu1 %v4055_v60, %s3563_s14  ;;  %1273 = vrot.lane.b32.xlu0 %v1198_v62, %s3548_s27 }
 0x420   :  { %1276 = vrot.lane.b32.xlu1 %v1198_v62, %s3564_s2  ;;  %1279 = vrot.lane.b32.xlu0 %v1198_v62, %s3565_s16 }
 0x424   :  { %1282 = vrot.lane.b32.xlu1 %v1198_v62, %s3566_s17  ;;  %1268 = vrot.lane.b32.xlu0 %v1198_v62, %s3559_s12 }
 0x428   :  { %1292 = vrot.lane.b32.xlu1 %v1198_v62, %s3558_s11  ;;  %1285 = vrot.lane.b32.xlu0 %v1198_v62, %s3567_s18 }
 0x42c   :  { %1288 = vrot.lane.b32.xlu1 %v1198_v62, %s3568_s19 }
 0x47e   :  { %v1248_v31 = vpop.permute.xlu1 %1247  ;;  %v1251_v35 = vpop.permute.xlu0 %1250 }
 0x47f   :  { %v1301_v26 = vcombine.low %v4055_v60, %v1251_v35 }
 0x481   :  { %v1308_v34 = vrot.slane %v1301_v26, %v3656_v57 }
 0x482   :  { %v1254_v1 = vpop.permute.xlu1 %1253  ;;  %v1295_v3 = vpop.permute.xlu0 %1294 }
 0x483   :  { %v1309_v20 = vcombine.low %v1248_v31, %v1254_v1 }
 0x485   :  { %v1316_v29 = vrot.slane %v1309_v20, %v3656_v57 }
 0x486   :  { %v1267_v2 = vpop.permute.xlu1 %1266  ;;  %v1260_v5 = vpop.permute.xlu0 %1259 }
 0x487   :  { %v1333_v39 = vcombine.low %v1308_v34, %v1316_v29  ;;  %v1334_v40 = vcombine.high %v1308_v34, %v1316_v29 }
 0x489   :  { %v1341_v22 = vrot.slane %v1333_v39, %v4107_v38  ;;  %v1348_v48 = vrot.slane %v1334_v40, %v4107_v38 }
 0x48a   :  { %v4081_v4 = vpop.permute.xlu1 %1256  ;;  %v1299_v8 = vpop.permute.xlu0 %1298 }
 0x48b   :  { %v3076_v55 = vcombine.low %v1341_v22, %v1348_v48  ;;  %v3078_v56 = vcombine.high %v1341_v22, %v1348_v48 }
 0x48d   :  { %v1445_v63 = vrot.slane %v3076_v55, %v3656_v57  ;;  %v1461_v0 = vrot.slane %v3078_v56, %v3656_v57 }
 0x48e   :  { %v4083_v7 = vpop.permute.xlu1 %1262  ;;  %v1274_v10 = vpop.permute.xlu0 %1273 }
 0x48f   :  { %v1317_v53 = vcombine.low %v4081_v4, %v4083_v7  ;;  %v1470_v7 = vcombine.high %v1445_v63, %v1461_v0 }
 0x491   :  { %v1324_v32 = vrot.slane %v1317_v53, %v3656_v57 }
 0x492   :  { %v1277_v9 = vpop.permute.xlu1 %1276  ;;  %v1280_v12 = vpop.permute.xlu0 %1279 }
 0x493   :  { %v1369_v37 = vcombine.low %v1274_v10, %v1280_v12 }
 0x495   :  { %v1376_v46 = vrot.slane %v1369_v37, %v3656_v57 }
 0x496   :  { %v1283_v11 = vpop.permute.xlu1 %1282  ;;  %v1269_v27 = vpop.permute.xlu0 %1268 }
 0x497   :  { %v1377_v30 = vcombine.low %v1277_v9, %v1283_v11  ;;  %v1271_v44 = vsel %vm1270_vm15, %v1267_v2, %v1269_v27 }
 0x498   :  { %v1325_v49 = vcombine.low %v1260_v5, %v1271_v44 }
 0x499   :  { %v1384_v43 = vrot.slane %v1377_v30, %v3656_v57 }
 0x49a   :  { %v1293_v6 = vpop.permute.xlu1 %1292  ;;  %v1286_v42 = vpop.permute.xlu0 %1285  ;;  %v1332_v58 = vrot.slane %v1325_v49, %v3656_v57 }
 0x49b   :  { %v1296_v41 = vsel %vm97_vm4, %v1293_v6, %v1295_v3  ;;  %v1401_v50 = vcombine.low %v1376_v46, %v1384_v43  ;;  %v1402_v51 = vcombine.high %v1376_v46, %v1384_v43 }
 0x49c   :  { %v1385_v47 = vcombine.low %v1286_v42, %v1296_v41  ;;  %v1349_v33 = vcombine.low %v1324_v32, %v1332_v58  ;;  %v1350_v31 = vcombine.high %v1324_v32, %v1332_v58 }
 0x49d   :  { %v1409_v59 = vrot.slane %v1401_v50, %v4107_v38  ;;  %v1416_v60 = vrot.slane %v1402_v51, %v4107_v38 }
 0x49e   :  { %v1289_v36 = vpop.permute.xlu1 %1288  ;;  %v1392_v54 = vrot.slane %v1385_v47, %v3656_v57  ;;  %v1357_v4 = vrot.slane %v1349_v33, %v4107_v38  ;;  %v1364_v5 = vrot.slane %v1350_v31, %v4107_v38 }
 0x49f   :  { %v1393_v45 = vcombine.low %v1289_v36, %v1299_v8  ;;  %v3080_v1 = vcombine.low %v1409_v59, %v1416_v60  ;;  %v3082_v35 = vcombine.high %v1409_v59, %v1416_v60  ;;  %v1469_v8 = vcombine.low %v1445_v63, %v1461_v0 }
 0x4a0   :  { %v3077_v6 = vcombine.low %v1357_v4, %v1364_v5  ;;  %v3079_v18 = vcombine.high %v1357_v4, %v1364_v5 }
 0x4a1   :  { %v1400_v52 = vrot.slane %v1393_v45, %v3656_v57  ;;  %v1513_v9 = vrot.slane %v3080_v1, %v3656_v57  ;;  %v1529_v10 = vrot.slane %v3082_v35, %v3656_v57  ;;  %v4153_v17 = vrot.slane %v1469_v8, %v4107_v38 }
 0x4a2   :  { %v1452_v26 = vrot.slane %v3077_v6, %v3656_v57  ;;  %v1468_v27 = vrot.slane %v3079_v18, %v3656_v57 }
 0x4a3   :  { %v4085_v13 = vpop.f32.mrb[4].mxu1  ;;  %v4087_v14 = vpop.f32.mrb[8].mxu0  ;;  %v1417_v61 = vcombine.low %v1392_v54, %v1400_v52  ;;  %v1418_v62 = vcombine.high %v1392_v54, %v1400_v52  ;;  %v1537_v34 = vcombine.low %v1513_v9, %v1529_v10 }
 0x4a4   :  { %2626 = vrot.lane.b32.xlu1 %v4085_v13, %s3551_s30  ;;  %v4091_v15 = vpop.f32.mrb[5].mxu1  ;;  %2623 = vrot.lane.b32.xlu0 %v4085_v13, %s3544_s15  ;;  %v3268_v16 = vpop.f32.mrb[9].mxu0  ;;  %s3570_s15 = smov 32   ;;  %v1486_v39 = vcombine.high %v1452_v26, %v1468_v27 }
 0x4a5   :  { %v2576_v21 = vpop.f32.mrb[6].mxu1  ;;  %v2616_v23 = vpop.f32.mrb[10].mxu0  ;;  %v1425_v2 = vrot.slane %v1417_v61, %v4107_v38  ;;  %v1432_v3 = vrot.slane %v1418_v62, %v4107_v38  ;;  %v1484_v16 = vrot.slane %v1470_v7, %v4107_v38  ;;  %v4174_v40 = vrot.slane %v1537_v34, %v4107_v38 }
 0x4a6   :  { %v2577_v24 = vpop.f32.mrb[7].mxu1  ;;  %v3269_v25 = vpop.f32.mrb[11].mxu0  ;;  %v1538_v23 = vcombine.high %v1513_v9, %v1529_v10  ;;  %v1500_v41 = vrot.slane %v1486_v39, %v4107_v38 }
 0x4a7   :  { %v3081_v11 = vcombine.low %v1425_v2, %v1432_v3  ;;  %v3083_v12 = vcombine.high %v1425_v2, %v1432_v3  ;;  %v1502_v28 = vcombine.high %v1484_v16, %v3535_v19  ;;  %v1569_v42 = vcombine.high %v4174_v40, %v3535_v19 }
 0x4a8   :  { %2642 = vrot.lane.b32.xlu1 %v4085_v13, %s3559_s12  ;;  %2629 = vrot.lane.b32.xlu0 %v4085_v13, %s3557_s10  ;;  %v1552_v24 = vrot.slane %v1538_v23, %v4107_v38  ;;  %v1504_v45 = vcombine.high %v1500_v41, %v3535_v19 }
 0x4a9   :  { %v1520_v20 = vrot.slane %v3081_v11, %v3656_v57  ;;  %v1536_v21 = vrot.slane %v3083_v12, %v3656_v57 }
 0x4aa   :  { %v1570_v44 = vcombine.high %v1552_v24, %v3535_v19 }
 0x4ab   :  { %v1553_v25 = vcombine.low %v1520_v20, %v1536_v21  ;;  %v1554_v30 = vcombine.high %v1520_v20, %v1536_v21 }
 0x4ac   :  { %2632 = vrot.lane.b32.xlu1 %v4085_v13, %s3561_s13  ;;  %2669 = vrot.lane.b32.xlu0 %v4087_v14, %s3558_s11 }
 0x4ad   :  { %v1561_v29 = vrot.slane %v1553_v25, %v4107_v38  ;;  %v1568_v37 = vrot.slane %v1554_v30, %v4107_v38 }
 0x4af   :  { %v1571_v46 = vcombine.high %v1561_v29, %v3535_v19  ;;  %v1572_v47 = vcombine.high %v1568_v37, %v3535_v19 }
 0x4b0   :  { %2638 = vrot.lane.b32.xlu1 %v4085_v13, %s3563_s14  ;;  %2635 = vrot.lane.b32.xlu0 %v4085_v13, %s3560_s0 }
 0x4b4   :  { %2648 = vrot.lane.b32.xlu1 %v4091_v15, %s3548_s27  ;;  %2651 = vrot.lane.b32.xlu0 %v4091_v15, %s3564_s2 }
 0x4b8   :  { %2654 = vrot.lane.b32.xlu1 %v4091_v15, %s3565_s16  ;;  %2657 = vrot.lane.b32.xlu0 %v4091_v15, %s3566_s17 }
 0x4bc   :  { %2667 = vrot.lane.b32.xlu1 %v4091_v15, %s3558_s11  ;;  %2644 = vrot.lane.b32.xlu0 %v4091_v15, %s3559_s12 }
 0x4c0   :  { %2663 = vrot.lane.b32.xlu1 %v4091_v15, %s3568_s19  ;;  %2660 = vrot.lane.b32.xlu0 %v4091_v15, %s3567_s18  ;;  %v1501_v15 = vcombine.high %v4153_v17, %v3535_v19 }
 0x4c4   :  { %1578 = vrot.lane.b32.xlu1 %v1484_v16, %s3570_s15  ;;  %2673 = vrot.lane.b32.xlu0 %v4087_v14, %s3562_s1  ;;  %v1485_v14 = vcombine.low %v1452_v26, %v1468_v27 }
 0x4c6   :  { %v1493_v36 = vrot.slane %v1485_v14, %v4107_v38 }
 0x4c8   :  { %1574 = vrot.lane.b32.xlu1 %v1501_v15, %s3571_s20  ;;  %1606 = vrot.lane.b32.xlu0 %v1552_v24, %s3570_s15  ;;  %v1503_v43 = vcombine.high %v1493_v36, %v3535_v19 }
 0x4cc   :  { %1582 = vrot.lane.b32.xlu1 %v1502_v28, %s3572_s21  ;;  %1614 = vrot.lane.b32.xlu0 %v1561_v29, %s3573_s22 }
 0x4d0   :  { %1586 = vrot.lane.b32.xlu1 %v1493_v36, %s3573_s22  ;;  %1622 = vrot.lane.b32.xlu0 %v1568_v37, %s3532_s25 }
 0x4d4   :  { %1594 = vrot.lane.b32.xlu1 %v1500_v41, %s3532_s25  ;;  %1602 = vrot.lane.b32.xlu0 %v1569_v42, %s3571_s20 }
 0x4d8   :  { %1590 = vrot.lane.b32.xlu1 %v1503_v43, %s3574_s23  ;;  %1610 = vrot.lane.b32.xlu0 %v1570_v44, %s3572_s21 }
 0x4dc   :  { %1598 = vrot.lane.b32.xlu1 %v1504_v45, %s3548_s27  ;;  %1618 = vrot.lane.b32.xlu0 %v1571_v46, %s3574_s23 }
 0x4e0   :  { %1626 = vrot.lane.b32.xlu0 %v1572_v47, %s3548_s27 }
 0x516   :  { %v2627_v22 = vpop.permute.xlu1 %2626  ;;  %v2624_v48 = vpop.permute.xlu0 %2623 }
 0x517   :  { %v2676_v49 = vcombine.low %v4085_v13, %v2627_v22 }
 0x519   :  { %v2683_v53 = vrot.slane %v2676_v49, %v3656_v57 }
 0x51a   :  { %v2643_v50 = vpop.permute.xlu1 %2642  ;;  %v2630_v51 = vpop.permute.xlu0 %2629 }
 0x51b   :  { %v2684_v52 = vcombine.low %v2624_v48, %v2630_v51 }
 0x51d   :  { %v2691_v54 = vrot.slane %v2684_v52, %v3656_v57 }
 0x51e   :  { %v2633_v55 = vpop.permute.xlu1 %2632  ;;  %v2670_v56 = vpop.permute.xlu0 %2669 }
 0x51f   :  { %v2708_v58 = vcombine.low %v2683_v53, %v2691_v54  ;;  %v2709_v59 = vcombine.high %v2683_v53, %v2691_v54 }
 0x521   :  { %v2716_v60 = vrot.slane %v2708_v58, %v4107_v38  ;;  %v2723_v61 = vrot.slane %v2709_v59, %v4107_v38 }
 0x522   :  { %v2639_v62 = vpop.permute.xlu1 %2638  ;;  %v2636_v32 = vpop.permute.xlu0 %2635 }
 0x523   :  { %v3111_v63 = vcombine.low %v2716_v60, %v2723_v61  ;;  %v3113_v0 = vcombine.high %v2716_v60, %v2723_v61  ;;  %v2692_v6 = vcombine.low %v2633_v55, %v2639_v62 }
 0x525   :  { %v2820_v13 = vrot.slane %v3111_v63, %v3656_v57  ;;  %v2836_v33 = vrot.slane %v3113_v0, %v3656_v57  ;;  %v2699_v27 = vrot.slane %v2692_v6, %v3656_v57 }
 0x526   :  { %v2649_v31 = vpop.permute.xlu1 %2648  ;;  %v2652_v1 = vpop.permute.xlu0 %2651 }
 0x527   :  { %v2845_v35 = vcombine.high %v2820_v13, %v2836_v33  ;;  %v2844_v2 = vcombine.low %v2820_v13, %v2836_v33 }
 0x529   :  { %v2859_v3 = vrot.slane %v2845_v35, %v4107_v38  ;;  %v4202_v4 = vrot.slane %v2844_v2, %v4107_v38 }
 0x52a   :  { %v2655_v5 = vpop.permute.xlu1 %2654  ;;  %v2658_v7 = vpop.permute.xlu0 %2657 }
 0x52b   :  { %v2744_v8 = vcombine.low %v2649_v31, %v2655_v5  ;;  %v2752_v9 = vcombine.low %v2652_v1, %v2658_v7  ;;  %2953 = vrot.lane.b32.xlu1 %v2859_v3, %s3570_s15  ;;  %v2876_v12 = vcombine.high %v4202_v4, %v3535_v19  ;;  %v2877_v26 = vcombine.high %v2859_v3, %v3535_v19 }
 0x52d   :  { %v2751_v10 = vrot.slane %v2744_v8, %v3656_v57  ;;  %v2759_v11 = vrot.slane %v2752_v9, %v3656_v57 }
 0x52e   :  { %v2668_v16 = vpop.permute.xlu1 %2667  ;;  %v2645_v18 = vpop.permute.xlu0 %2644 }
 0x52f   :  { %v2776_v20 = vcombine.low %v2751_v10, %v2759_v11  ;;  %v2777_v21 = vcombine.high %v2751_v10, %v2759_v11  ;;  %v2646_v23 = vsel %vm1270_vm15, %v2643_v50, %v2645_v18  ;;  %2949 = vrot.lane.b32.xlu1 %v2876_v12, %s3571_s20  ;;  %v2671_v39 = vsel %vm97_vm4, %v2668_v16, %v2670_v56 }
 0x530   :  { %v2700_v15 = vcombine.low %v2636_v32, %v2646_v23  ;;  %vm1637_vm4 = vcmask 654336  }
 0x531   :  { %v2784_v24 = vrot.slane %v2776_v20, %v4107_v38  ;;  %v2791_v25 = vrot.slane %v2777_v21, %v4107_v38 }
 0x532   :  { %v2707_v28 = vrot.slane %v2700_v15, %v3656_v57  ;;  %v2664_v29 = vpop.permute.xlu1 %2663  ;;  %v2661_v14 = vpop.permute.xlu0 %2660 }
 0x533   :  { %v3115_v30 = vcombine.low %v2784_v24, %v2791_v25  ;;  %v3117_v34 = vcombine.high %v2784_v24, %v2791_v25  ;;  %2957 = vrot.lane.b32.xlu1 %v2877_v26, %s3572_s21  ;;  %v2760_v43 = vcombine.low %v2661_v14, %v2671_v39 }
 0x534   :  { %v2724_v36 = vcombine.low %v2699_v27, %v2707_v28  ;;  %v2725_v37 = vcombine.high %v2699_v27, %v2707_v28 }
 0x535   :  { %v2888_v41 = vrot.slane %v3115_v30, %v3656_v57  ;;  %v2904_v42 = vrot.slane %v3117_v34, %v3656_v57  ;;  %v2767_v51 = vrot.slane %v2760_v43, %v3656_v57 }
 0x536   :  { %v2732_v44 = vrot.slane %v2724_v36, %v4107_v38  ;;  %v2739_v45 = vrot.slane %v2725_v37, %v4107_v38  ;;  %v1579_v46 = vpop.permute.xlu1 %1578  ;;  %v2674_v47 = vpop.permute.xlu0 %2673 }
 0x537   :  { %v2768_v22 = vcombine.low %v2664_v29, %v2674_v47  ;;  %v2913_v48 = vcombine.high %v2888_v41, %v2904_v42  ;;  %v2912_v11 = vcombine.low %v2888_v41, %v2904_v42 }
 0x538   :  { %v3112_v49 = vcombine.low %v2732_v44, %v2739_v45  ;;  %v3114_v50 = vcombine.high %v2732_v44, %v2739_v45 }
 0x539   :  { %v2775_v52 = vrot.slane %v2768_v22, %v3656_v57  ;;  %v2927_v53 = vrot.slane %v2913_v48, %v4107_v38  ;;  %v2920_v21 = vrot.slane %v2912_v11, %v4107_v38 }
 0x53a   :  { %v1575_v54 = vpop.permute.xlu1 %1574  ;;  %v1607_v55 = vpop.permute.xlu0 %1606  ;;  %v2827_v56 = vrot.slane %v3112_v49, %v3656_v57  ;;  %v2843_v58 = vrot.slane %v3114_v50, %v3656_v57 }
 0x53b   :  { %v2792_v59 = vcombine.low %v2767_v51, %v2775_v52  ;;  %v2793_v60 = vcombine.high %v2767_v51, %v2775_v52  ;;  %2981 = vrot.lane.b32.xlu0 %v2927_v53, %s3570_s15  ;;  %v2945_v36 = vcombine.high %v2927_v53, %v3535_v19 }
 0x53c   :  { %v2860_v61 = vcombine.low %v2827_v56, %v2843_v58  ;;  %v2861_v33 = vcombine.high %v2827_v56, %v2843_v58 }
 0x53d   :  { %v2800_v62 = vrot.slane %v2792_v59, %v4107_v38  ;;  %v2807_v32 = vrot.slane %v2793_v60, %v4107_v38 }
 0x53e   :  { %v1583_v63 = vpop.permute.xlu1 %1582  ;;  %v1615_v0 = vpop.permute.xlu0 %1614  ;;  %v2868_v13 = vrot.slane %v2860_v61, %v4107_v38  ;;  %v2875_v7 = vrot.slane %v2861_v33, %v4107_v38 }
 0x53f   :  { %v3116_v31 = vcombine.low %v2800_v62, %v2807_v32  ;;  %v3118_v1 = vcombine.high %v2800_v62, %v2807_v32 }
 0x540   :  { %2961 = vrot.lane.b32.xlu1 %v2868_v13, %s3573_s22  ;;  %v2878_v16 = vcombine.high %v2868_v13, %v3535_v19  ;;  %v2879_v23 = vcombine.high %v2875_v7, %v3535_v19 }
 0x541   :  { %v2895_v35 = vrot.slane %v3116_v31, %v3656_v57  ;;  %v2911_v2 = vrot.slane %v3118_v1, %v3656_v57  ;;  %v1630_v57 = vsel %vm1629_vm0, %v4153_v17, %v1575_v54 }
 0x542   :  { %v1587_v3 = vpop.permute.xlu1 %1586  ;;  %v1623_v5 = vpop.permute.xlu0 %1622  ;;  %v1632_v26 = vsel %vm1631_vm1, %v1630_v57, %v1579_v46 }
 0x543   :  { %v2928_v8 = vcombine.low %v2895_v35, %v2911_v2  ;;  %v2929_v10 = vcombine.high %v2895_v35, %v2911_v2  ;;  %v1634_v17 = vsel %vm1633_vm2, %v1632_v26, %v1583_v63 }
 0x544   :  { %2969 = vrot.lane.b32.xlu1 %v2875_v7, %s3532_s25  ;;  %v1636_v27 = vsel %vm1635_vm3, %v1634_v17, %v1587_v3 }
 0x545   :  { %v2936_v9 = vrot.slane %v2928_v8, %v4107_v38  ;;  %v2943_v20 = vrot.slane %v2929_v10, %v4107_v38  ;;  %v2944_v38 = vcombine.high %v2920_v21, %v3535_v19 }
 0x546   :  { %v1595_v12 = vpop.permute.xlu1 %1594  ;;  %v1603_v6 = vpop.permute.xlu0 %1602 }
 0x547   :  { %v1643_v18 = vsel %vm1629_vm0, %v4174_v40, %v1603_v6  ;;  %2989 = vrot.lane.b32.xlu0 %v2936_v9, %s3573_s22  ;;  %v2946_v45 = vcombine.high %v2936_v9, %v3535_v19  ;;  %v2947_v46 = vcombine.high %v2943_v20, %v3535_v19 }
 0x548   :  { %2965 = vrot.lane.b32.xlu1 %v2878_v16, %s3574_s23  ;;  %v1644_v24 = vsel %vm1631_vm1, %v1643_v18, %v1607_v55 }
 0x54a   :  { %v1591_v15 = vpop.permute.xlu1 %1590  ;;  %v1611_v25 = vpop.permute.xlu0 %1610 }
 0x54b   :  { %v1645_v40 = vsel %vm1633_vm2, %v1644_v24, %v1611_v25  ;;  %2997 = vrot.lane.b32.xlu0 %v2943_v20, %s3532_s25  ;;  %v1638_v14 = vsel %vm1637_vm4, %v1636_v27, %v1591_v15  ;;  %s3575_s25 = smov [#allocation8]  }
 0x54c   :  { %2973 = vrot.lane.b32.xlu1 %v2879_v23, %s3548_s27  ;;  %v1646_v28 = vsel %vm1635_vm3, %v1645_v40, %v1615_v0  ;;  %v1640_v37 = vsel %vm1639_vm5, %v1638_v14, %v1595_v12  ;;  %s3029_s3 = sshll.u32 %s3575_s25, 4  ;;  %s3030_s3 = int_to_ptr.vmem [resolvable:$true] %s3029_s3 }
 0x54d   :  { %s3503_s24 = scalar_lea.vmem %s3030_s3, 256  ;;  %p3508_p3 = scmp.lt.s32.totalorder %s3030_s3, %s3030_s3 }
 0x54e   :  { %v1619_v29 = vpop.permute.xlu0 %1618  ;;  %v1599_v34 = vpop.permute.xlu1 %1598  ;;  %p3504_p2 = scmp.ne.s32.totalorder %s3030_s3, %s3503_s24  ;;  %p3509_p4 = scmp.lt.s32.totalorder %s3503_s24, %s3503_s24 }
 0x54f   :  { %v1647_v30 = vsel %vm1637_vm4, %v1646_v28, %v1619_v29  ;;  %2977 = vrot.lane.b32.xlu0 %v2944_v38, %s3571_s20  ;;  %v1642_v42 = vsel %vm1641_vm6, %v1640_v37, %v1599_v34 }
 0x550   :  { %v1648_v39 = vsel %vm1639_vm5, %v1647_v30, %v1623_v5  ;;  %p3510_p5 = por %p3509_p4, %p3508_p3 }
 0x552   :  { %v1627_v41 = vpop.permute.xlu0 %1626  ;;  %p3511_p6 = pnand %p3510_p5, %p3504_p2 }
 0x553   :  { %v1649_v43 = vsel %vm1641_vm6, %v1648_v39, %v1627_v41  ;;  %2985 = vrot.lane.b32.xlu0 %v2945_v36, %s3572_s21 }
 0x554   :  { %v1652_v44 = vcombine.low %v1642_v42, %v1649_v43 }
 0x556   :  { %1654 = vst [vmem:[#allocation8] sm:$0xff] %v1652_v44 }
 0x557   :  { %2993 = vrot.lane.b32.xlu0 %v2946_v45, %s3574_s23 }
 0x55b   :  { %3001 = vrot.lane.b32.xlu0 %v2947_v46, %s3548_s27 }
 0x59d   :  { %v2954_v47 = vpop.permute.xlu1 %2953 }
 0x5a1   :  { %v2950_v22 = vpop.permute.xlu1 %2949 }
 0x5a2   :  { %v3004_v56 = vsel %vm1629_vm0, %v4202_v4, %v2950_v22 }
 0x5a3   :  { %v3005_v61 = vsel %vm1631_vm1, %v3004_v56, %v2954_v47 }
 0x5a5   :  { %v2958_v48 = vpop.permute.xlu1 %2957 }
 0x5a6   :  { %v3006_v62 = vsel %vm1633_vm2, %v3005_v61, %v2958_v48 }
 0x5ad   :  { %v2982_v49 = vpop.permute.xlu0 %2981 }
 0x5b2   :  { %v2962_v50 = vpop.permute.xlu1 %2961 }
 0x5b3   :  { %v3007_v32 = vsel %vm1635_vm3, %v3006_v62, %v2962_v50 }
 0x5b6   :  { %v2970_v53 = vpop.permute.xlu1 %2969 }
 0x5b9   :  { %v2990_v51 = vpop.permute.xlu0 %2989 }
 0x5ba   :  { %v2966_v58 = vpop.permute.xlu1 %2965 }
 0x5bb   :  { %v3008_v13 = vsel %vm1637_vm4, %v3007_v32, %v2966_v58 }
 0x5bc   :  { %v3009_v31 = vsel %vm1639_vm5, %v3008_v13, %v2970_v53 }
 0x5bd   :  { %v2998_v52 = vpop.permute.xlu0 %2997 }
 0x5be   :  { %v2974_v4 = vpop.permute.xlu1 %2973 }
 0x5bf   :  { %v3010_v2 = vsel %vm1641_vm6, %v3009_v31, %v2974_v4 }
 0x5c1   :  { %v2978_v54 = vpop.permute.xlu0 %2977 }
 0x5c2   :  { %v3011_v55 = vsel %vm1629_vm0, %v2920_v21, %v2978_v54 }
 0x5c3   :  { %v3012_v59 = vsel %vm1631_vm1, %v3011_v55, %v2982_v49 }
 0x5c5   :  { %v2986_v19 = vpop.permute.xlu0 %2985 }
 0x5c6   :  { %v3013_v60 = vsel %vm1633_vm2, %v3012_v59, %v2986_v19 }
 0x5c7   :  { %v3014_v63 = vsel %vm1635_vm3, %v3013_v60, %v2990_v51 }
 0x5c9   :  { %v2994_v0 = vpop.permute.xlu0 %2993 }
 0x5ca   :  { %v3015_v33 = vsel %vm1637_vm4, %v3014_v63, %v2994_v0 }
 0x5cb   :  { %v3016_v1 = vsel %vm1639_vm5, %v3015_v33, %v2998_v52 }
 0x5cd   :  { %v3002_v35 = vpop.permute.xlu0 %3001 }
 0x5ce   :  { %v3017_v3 = vsel %vm1641_vm6, %v3016_v1, %v3002_v35 }
 0x5cf   :  { %v3020_v5 = vcombine.low %v3010_v2, %v3017_v3 }
 0x5d1   :  { %3023 = vst [vmem:[#allocation8 + $0x8] sm:$0xff] %v3020_v5 }
 0x5d2   :  { %3514 = shalt.err (!%p3511_p6)
}
 0x5d3   :  { %s3515_s28 = scalar_lea.hbm %s4300_s4, 256 }
 0x5d4   :  { %p3516_p7 = scmp.ne.s32.totalorder %s4300_s4, %s3515_s28  ;;  %p3519_p8 = scmp.lt.u32.totalorder %s3515_s28, %s4300_s4 }
 0x5d6   :  { %p3521_p9 = pnand %p3519_p8, %p3516_p7 }
 0x5d8   :  { %3524 = shalt.err (!%p3521_p9)
}
 0x5d9   :  { %s3576_s7 = smov 128   ;;  %s3577_s8 = smov 8  }
 0x5da   :  { %3035 = dma.vmem_to_hbm [thread:$0]  %s3030_s3, 256, %s4300_s4, [#allocation5], %s3576_s7, %s3576_s7, %s3577_s8  }
 0x5db   :  { %3529 = dma.done.wait [#allocation5], 256  }
 0x5dc   :  { %3530 = vsyncadd [#allocation5], 4294967040 }
 0x5dd   :  { %3039 = vsyncpa [#allocation4], 1 }
 0x5de   :  { %3040 = vsyncpa [#allocation7], 1 }
 0x5df   :  { %3041 = vsyncpa [#allocation5], 1 }

</bundles_post_ra>
